<compile_context>
chip_gen: v5e
topology: v5e:2x2
jax: 0.10.0
libtpu: 0.0.40
codegen_flags: <defaults>
</compile_context>

<pallas_src>
import numpy as np
import jax
import jax.numpy as jnp
from jax import lax
from jax.experimental import pallas as pl
from jax.experimental.pallas import tpu as pltpu


# ------------------- trace-time one-hot im2col gather matrices ----------------
def _selection_matrices(n, h, w):
    """sel[t, s*h*w + p, s*m_out + q] = 1 iff input pixel p is the tap-t source
    of output pixel q of sample s (3x3 conv, stride 2, pad 1).  Padding taps get
    all-zero columns.  Batch is folded along the lane (column) axis."""
    ho, wo = (h + 1) // 2, (w + 1) // 2
    m_out = ho * wo
    sel = np.zeros((9, n * h * w, n * m_out), np.float32)
    for kh in range(3):
        for kw in range(3):
            t = kh * 3 + kw
            for io in range(ho):
                hs = 2 * io + kh - 1
                if hs < 0 or hs >= h:
                    continue
                for jo in range(wo):
                    ws = 2 * jo + kw - 1
                    if ws < 0 or ws >= w:
                        continue
                    for s in range(n):
                        sel[t, s * h * w + hs * w + ws, s * m_out + io * wo + jo] = 1.0
    return sel


# --------------------------- fused Pallas kernel ------------------------------
def make_cnn_kernel(num_layers):
    """Refs: x (c_in0, n*H*W) bf16, then per layer
    [w_stk (9*c_out, c_in) bf16, sel (9, n*h*w, n*m_out) bf16,
     gamma (c_out, 1) f32, beta (c_out, 1) f32], output (c_last, n*m_last) f32."""

    def kernel(*refs):
        x_ref, o_ref = refs[0], refs[-1]
        feats = x_ref[...]                        # (c_in, n*h*w) bf16, lane-dense
        for li in range(num_layers):
            w_ref = refs[1 + 4 * li]              # (9*c_out, c_in)      bf16
            sel_ref = refs[2 + 4 * li]            # (9, n*h*w, n*m_out)  bf16
            gamma_ref = refs[3 + 4 * li]          # (c_out, 1)           f32
            beta_ref = refs[4 + 4 * li]           # (c_out, 1)           f32
            c_out = gamma_ref.shape[0]
            n_cols = sel_ref.shape[2]             # n * m_out

            # (1) Channel contraction for all 9 taps in ONE MXU matmul:
            #     wf[t*c_out + co, p] = sum_ci W[co, ci, t] * feats[ci, p]
            wf = jnp.dot(w_ref[...], feats, preferred_element_type=jnp.float32)
            wf = wf.astype(jnp.bfloat16)          # (9*c_out, n*h*w)

            # (2) Spatial gather per tap via precomputed one-hot matmuls (each
            #     column selects <=1 element -> exact), accumulated in f32.
            #     Slices of wf are multiples of c_out (8/16) -> sublane aligned.
            acc = jnp.dot(wf[0:c_out, :], sel_ref[0],
                          preferred_element_type=jnp.float32)
            for t in range(1, 9):
                acc = acc + jnp.dot(wf[t * c_out:(t + 1) * c_out, :], sel_ref[t],
                                    preferred_element_type=jnp.float32)
            # acc: (c_out, n*m_out) f32 == conv output for the whole batch.

            # (3) BatchNorm2d (training-mode batch stats, biased variance,
            #     eps=1e-5, centered two-pass) + ReLU, all in f32, one pass for
            #     the whole batch.
            inv_m = 1.0 / float(n_cols)
            mean = acc.sum(axis=1, keepdims=True) * inv_m
            cen = acc - mean
            var = (cen * cen).sum(axis=1, keepdims=True) * inv_m
            scale = lax.rsqrt(var + 1e-5) * gamma_ref[...]      # (c_out, 1)
            act = jnp.maximum(cen * scale + beta_ref[...], 0.0)

            if li + 1 < num_layers:
                feats = act.astype(jnp.bfloat16)  # next layer's (c_in, n*h*w)
            else:
                o_ref[...] = act                  # single lane-batched store

    return kernel


# ------------------------------- JAX wrapper -----------------------------------
@jax.jit
def cnn_forward(x, params):
    """x: (N, 3, H, W) NCHW -> (N, C_last, H/2^L, W/2^L) NCHW."""
    n, c0, h, w = x.shape
    chs = tuple(int(p["w"].shape[0]) for p in params)
    num_layers = len(chs)

    flat = []
    hh, ww = h, w
    for p in params:
        c_out, c_in = int(p["w"].shape[0]), int(p["w"].shape[1])
        # (c_out, c_in, 3, 3) -> (9*c_out, c_in); row index = (kh*3+kw)*c_out + co
        w_stk = jnp.transpose(p["w"], (2, 3, 0, 1)).reshape(9 * c_out, c_in)
        sel = jnp.asarray(_selection_matrices(n, hh, ww), jnp.bfloat16)
        flat += [
            w_stk.astype(jnp.bfloat16),
            sel,
            p["gamma"].reshape(c_out, 1).astype(jnp.float32),
            p["beta"].reshape(c_out, 1).astype(jnp.float32),
        ]
        hh, ww = (hh + 1) // 2, (ww + 1) // 2

    # Lane-batched bf16 input: (3, N*H*W), column index = s*H*W + i*W + j.
    x_mat = jnp.transpose(x, (1, 0, 2, 3)).reshape(c0, n * h * w).astype(jnp.bfloat16)

    out = pl.pallas_call(
        make_cnn_kernel(num_layers),
        out_shape=jax.ShapeDtypeStruct((chs[-1], n * hh * ww), jnp.float32),
        in_specs=[pl.BlockSpec(memory_space=pltpu.MemorySpace.VMEM)]
        * (1 + 4 * num_layers),
        out_specs=pl.BlockSpec(memory_space=pltpu.MemorySpace.VMEM),
    )(x_mat, *flat)

    # (c_last, n, ho, wo) -> (n, c_last, ho, wo); tiny output, cheap XLA transpose.
    return jnp.transpose(out.reshape(chs[-1], n, hh, ww), (1, 0, 2, 3))


# --------------------------- pure-JAX f32 reference ----------------------------
def cnn_forward_ref(x, params):
    for p in params:
        y = lax.conv_general_dilated(
            x, p["w"], window_strides=(2, 2), padding=((1, 1), (1, 1)),
            dimension_numbers=("NCHW", "OIHW", "NCHW"))
        mean = jnp.mean(y, axis=(0, 2, 3), keepdims=True)
        var = jnp.mean(jnp.square(y - mean), axis=(0, 2, 3), keepdims=True)
        g = p["gamma"].reshape(1, -1, 1, 1)
        b = p["beta"].reshape(1, -1, 1, 1)
        x = jnp.maximum((y - mean) * lax.rsqrt(var + 1e-5) * g + b, 0.0)
    return x


def init_cnn_params(key, chs):
    """Deterministic synthetic parameters matching the PyTorch module shapes."""
    params = []
    ch_i = 3
    for ch_o in chs:
        key, kw_, kg_, kb_ = jax.random.split(key, 4)
        fan_in = ch_i * 3 * 3
        w = jax.random.normal(kw_, (ch_o, ch_i, 3, 3), jnp.float32) * (fan_in ** -0.5)
        gamma = 1.0 + 0.1 * jax.random.normal(kg_, (ch_o, 1), jnp.float32)
        beta = 0.1 * jax.random.normal(kb_, (ch_o, 1), jnp.float32)
        params.append({"w": w, "gamma": gamma, "beta": beta})
        ch_i = ch_o
    return params


# --------------------------------- main -----------------------------------------
if __name__ == "__main__":
    chs = [8, 16]                       # args.cnn_chs = "8,16"

    key = jax.random.PRNGKey(0)
    key, kx = jax.random.split(key)
    x = jax.random.normal(kx, (2, 3, 16, 16), jnp.float32)   # NCHW, like PyTorch
    params = init_cnn_params(jax.random.PRNGKey(42), chs)

    y = cnn_forward(x, params)
    jax.block_until_ready(y)

    assert y.shape == (2, chs[-1], 4, 4), y.shape
    assert bool(jnp.all(jnp.isfinite(y)))

    # Cross-check vs pure-JAX f32 reference (loose tol: kernel rounds MXU
    # operands — input, weights, per-tap partial sums — to bf16).
    y_ref = cnn_forward_ref(x, params)
    max_err = float(jnp.max(jnp.abs(y - y_ref)))
    assert max_err < 2e-1, max_err

    print("KERNEL_OK")
</pallas_src>

<mosaic_0001>
module attributes {stable_mosaic.version = 11 : i64} {
  func.func @kernel(%arg0: memref<3x512xbf16, #tpu.memory_space<vmem>>, %arg1: memref<72x3xbf16, #tpu.memory_space<vmem>>, %arg2: memref<9x512x128xbf16, #tpu.memory_space<vmem>>, %arg3: memref<8x1xf32, #tpu.memory_space<vmem>>, %arg4: memref<8x1xf32, #tpu.memory_space<vmem>>, %arg5: memref<144x8xbf16, #tpu.memory_space<vmem>>, %arg6: memref<9x128x32xbf16, #tpu.memory_space<vmem>>, %arg7: memref<16x1xf32, #tpu.memory_space<vmem>>, %arg8: memref<16x1xf32, #tpu.memory_space<vmem>>, %arg9: memref<16x32xf32, #tpu.memory_space<vmem>>) attributes {dimension_semantics = [], scalar_prefetch = 0 : i64, scratch_operands = 0 : i64, tpu.core_type = #tpu.core_type<tc>} {
    %c0 = arith.constant 0 : index
    %c0_0 = arith.constant 0 : index
    %0 = vector.load %arg0[%c0, %c0_0] : memref<3x512xbf16, #tpu.memory_space<vmem>>, vector<3x512xbf16>
    %c0_1 = arith.constant 0 : index
    %c0_2 = arith.constant 0 : index
    %1 = vector.load %arg1[%c0_1, %c0_2] : memref<72x3xbf16, #tpu.memory_space<vmem>>, vector<72x3xbf16>
    %cst = arith.constant dense<0.000000e+00> : vector<72x512xf32>
    %2 = tpu.matmul %1, %0, %cst {dimension_numbers = #tpu.dot_dimension_numbers<[1], [0], [0], [1], [0, 0, 1, 1], [], []>} : vector<72x3xbf16>, vector<3x512xbf16>, vector<72x512xf32> -> vector<72x512xf32>
    %3 = arith.truncf %2 : vector<72x512xf32> to vector<72x512xbf16>
    %4 = vector.extract_strided_slice %3 {offsets = [0, 0], sizes = [8, 512], strides = [1, 1]} : vector<72x512xbf16> to vector<8x512xbf16>
    %c0_3 = arith.constant 0 : index
    %c0_4 = arith.constant 0 : index
    %c0_5 = arith.constant 0 : index
    %5 = vector.load %arg2[%c0_3, %c0_4, %c0_5] : memref<9x512x128xbf16, #tpu.memory_space<vmem>>, vector<1x512x128xbf16>
    %6 = vector.shape_cast %5 : vector<1x512x128xbf16> to vector<512x128xbf16>
    %cst_6 = arith.constant dense<0.000000e+00> : vector<8x128xf32>
    %7 = tpu.matmul %4, %6, %cst_6 {dimension_numbers = #tpu.dot_dimension_numbers<[1], [0], [0], [1], [0, 0, 1, 1], [], []>} : vector<8x512xbf16>, vector<512x128xbf16>, vector<8x128xf32> -> vector<8x128xf32>
    %8 = vector.extract_strided_slice %3 {offsets = [8, 0], sizes = [8, 512], strides = [1, 1]} : vector<72x512xbf16> to vector<8x512xbf16>
    %c1 = arith.constant 1 : index
    %c0_7 = arith.constant 0 : index
    %c0_8 = arith.constant 0 : index
    %9 = vector.load %arg2[%c1, %c0_7, %c0_8] : memref<9x512x128xbf16, #tpu.memory_space<vmem>>, vector<1x512x128xbf16>
    %10 = vector.shape_cast %9 : vector<1x512x128xbf16> to vector<512x128xbf16>
    %cst_9 = arith.constant dense<0.000000e+00> : vector<8x128xf32>
    %11 = tpu.matmul %8, %10, %cst_9 {dimension_numbers = #tpu.dot_dimension_numbers<[1], [0], [0], [1], [0, 0, 1, 1], [], []>} : vector<8x512xbf16>, vector<512x128xbf16>, vector<8x128xf32> -> vector<8x128xf32>
    %12 = arith.addf %7, %11 : vector<8x128xf32>
    %13 = vector.extract_strided_slice %3 {offsets = [16, 0], sizes = [8, 512], strides = [1, 1]} : vector<72x512xbf16> to vector<8x512xbf16>
    %c2 = arith.constant 2 : index
    %c0_10 = arith.constant 0 : index
    %c0_11 = arith.constant 0 : index
    %14 = vector.load %arg2[%c2, %c0_10, %c0_11] : memref<9x512x128xbf16, #tpu.memory_space<vmem>>, vector<1x512x128xbf16>
    %15 = vector.shape_cast %14 : vector<1x512x128xbf16> to vector<512x128xbf16>
    %cst_12 = arith.constant dense<0.000000e+00> : vector<8x128xf32>
    %16 = tpu.matmul %13, %15, %cst_12 {dimension_numbers = #tpu.dot_dimension_numbers<[1], [0], [0], [1], [0, 0, 1, 1], [], []>} : vector<8x512xbf16>, vector<512x128xbf16>, vector<8x128xf32> -> vector<8x128xf32>
    %17 = arith.addf %12, %16 : vector<8x128xf32>
    %18 = vector.extract_strided_slice %3 {offsets = [24, 0], sizes = [8, 512], strides = [1, 1]} : vector<72x512xbf16> to vector<8x512xbf16>
    %c3 = arith.constant 3 : index
    %c0_13 = arith.constant 0 : index
    %c0_14 = arith.constant 0 : index
    %19 = vector.load %arg2[%c3, %c0_13, %c0_14] : memref<9x512x128xbf16, #tpu.memory_space<vmem>>, vector<1x512x128xbf16>
    %20 = vector.shape_cast %19 : vector<1x512x128xbf16> to vector<512x128xbf16>
    %cst_15 = arith.constant dense<0.000000e+00> : vector<8x128xf32>
    %21 = tpu.matmul %18, %20, %cst_15 {dimension_numbers = #tpu.dot_dimension_numbers<[1], [0], [0], [1], [0, 0, 1, 1], [], []>} : vector<8x512xbf16>, vector<512x128xbf16>, vector<8x128xf32> -> vector<8x128xf32>
    %22 = arith.addf %17, %21 : vector<8x128xf32>
    %23 = vector.extract_strided_slice %3 {offsets = [32, 0], sizes = [8, 512], strides = [1, 1]} : vector<72x512xbf16> to vector<8x512xbf16>
    %c4 = arith.constant 4 : index
    %c0_16 = arith.constant 0 : index
    %c0_17 = arith.constant 0 : index
    %24 = vector.load %arg2[%c4, %c0_16, %c0_17] : memref<9x512x128xbf16, #tpu.memory_space<vmem>>, vector<1x512x128xbf16>
    %25 = vector.shape_cast %24 : vector<1x512x128xbf16> to vector<512x128xbf16>
    %cst_18 = arith.constant dense<0.000000e+00> : vector<8x128xf32>
    %26 = tpu.matmul %23, %25, %cst_18 {dimension_numbers = #tpu.dot_dimension_numbers<[1], [0], [0], [1], [0, 0, 1, 1], [], []>} : vector<8x512xbf16>, vector<512x128xbf16>, vector<8x128xf32> -> vector<8x128xf32>
    %27 = arith.addf %22, %26 : vector<8x128xf32>
    %28 = vector.extract_strided_slice %3 {offsets = [40, 0], sizes = [8, 512], strides = [1, 1]} : vector<72x512xbf16> to vector<8x512xbf16>
    %c5 = arith.constant 5 : index
    %c0_19 = arith.constant 0 : index
    %c0_20 = arith.constant 0 : index
    %29 = vector.load %arg2[%c5, %c0_19, %c0_20] : memref<9x512x128xbf16, #tpu.memory_space<vmem>>, vector<1x512x128xbf16>
    %30 = vector.shape_cast %29 : vector<1x512x128xbf16> to vector<512x128xbf16>
    %cst_21 = arith.constant dense<0.000000e+00> : vector<8x128xf32>
    %31 = tpu.matmul %28, %30, %cst_21 {dimension_numbers = #tpu.dot_dimension_numbers<[1], [0], [0], [1], [0, 0, 1, 1], [], []>} : vector<8x512xbf16>, vector<512x128xbf16>, vector<8x128xf32> -> vector<8x128xf32>
    %32 = arith.addf %27, %31 : vector<8x128xf32>
    %33 = vector.extract_strided_slice %3 {offsets = [48, 0], sizes = [8, 512], strides = [1, 1]} : vector<72x512xbf16> to vector<8x512xbf16>
    %c6 = arith.constant 6 : index
    %c0_22 = arith.constant 0 : index
    %c0_23 = arith.constant 0 : index
    %34 = vector.load %arg2[%c6, %c0_22, %c0_23] : memref<9x512x128xbf16, #tpu.memory_space<vmem>>, vector<1x512x128xbf16>
    %35 = vector.shape_cast %34 : vector<1x512x128xbf16> to vector<512x128xbf16>
    %cst_24 = arith.constant dense<0.000000e+00> : vector<8x128xf32>
    %36 = tpu.matmul %33, %35, %cst_24 {dimension_numbers = #tpu.dot_dimension_numbers<[1], [0], [0], [1], [0, 0, 1, 1], [], []>} : vector<8x512xbf16>, vector<512x128xbf16>, vector<8x128xf32> -> vector<8x128xf32>
    %37 = arith.addf %32, %36 : vector<8x128xf32>
    %38 = vector.extract_strided_slice %3 {offsets = [56, 0], sizes = [8, 512], strides = [1, 1]} : vector<72x512xbf16> to vector<8x512xbf16>
    %c7 = arith.constant 7 : index
    %c0_25 = arith.constant 0 : index
    %c0_26 = arith.constant 0 : index
    %39 = vector.load %arg2[%c7, %c0_25, %c0_26] : memref<9x512x128xbf16, #tpu.memory_space<vmem>>, vector<1x512x128xbf16>
    %40 = vector.shape_cast %39 : vector<1x512x128xbf16> to vector<512x128xbf16>
    %cst_27 = arith.constant dense<0.000000e+00> : vector<8x128xf32>
    %41 = tpu.matmul %38, %40, %cst_27 {dimension_numbers = #tpu.dot_dimension_numbers<[1], [0], [0], [1], [0, 0, 1, 1], [], []>} : vector<8x512xbf16>, vector<512x128xbf16>, vector<8x128xf32> -> vector<8x128xf32>
    %42 = arith.addf %37, %41 : vector<8x128xf32>
    %43 = vector.extract_strided_slice %3 {offsets = [64, 0], sizes = [8, 512], strides = [1, 1]} : vector<72x512xbf16> to vector<8x512xbf16>
    %c8 = arith.constant 8 : index
    %c0_28 = arith.constant 0 : index
    %c0_29 = arith.constant 0 : index
    %44 = vector.load %arg2[%c8, %c0_28, %c0_29] : memref<9x512x128xbf16, #tpu.memory_space<vmem>>, vector<1x512x128xbf16>
    %45 = vector.shape_cast %44 : vector<1x512x128xbf16> to vector<512x128xbf16>
    %cst_30 = arith.constant dense<0.000000e+00> : vector<8x128xf32>
    %46 = tpu.matmul %43, %45, %cst_30 {dimension_numbers = #tpu.dot_dimension_numbers<[1], [0], [0], [1], [0, 0, 1, 1], [], []>} : vector<8x512xbf16>, vector<512x128xbf16>, vector<8x128xf32> -> vector<8x128xf32>
    %47 = arith.addf %42, %46 : vector<8x128xf32>
    %cst_31 = arith.constant dense<0.000000e+00> : vector<8xf32>
    %48 = vector.multi_reduction <add>, %47, %cst_31 [1] : vector<8x128xf32> to vector<8xf32>
    %49 = vector.shape_cast %48 : vector<8xf32> to vector<8x1xf32>
    %cst_32 = arith.constant 7.812500e-03 : f32
    %50 = vector.broadcast %cst_32 : f32 to vector<8x1xf32>
    %51 = arith.mulf %49, %50 : vector<8x1xf32>
    %52 = vector.broadcast %51 : vector<8x1xf32> to vector<8x128xf32>
    %53 = arith.subf %47, %52 : vector<8x128xf32>
    %54 = arith.mulf %53, %53 : vector<8x128xf32>
    %cst_33 = arith.constant dense<0.000000e+00> : vector<8xf32>
    %55 = vector.multi_reduction <add>, %54, %cst_33 [1] : vector<8x128xf32> to vector<8xf32>
    %56 = vector.shape_cast %55 : vector<8xf32> to vector<8x1xf32>
    %cst_34 = arith.constant 7.812500e-03 : f32
    %57 = vector.broadcast %cst_34 : f32 to vector<8x1xf32>
    %58 = arith.mulf %56, %57 : vector<8x1xf32>
    %cst_35 = arith.constant 9.99999974E-6 : f32
    %59 = vector.broadcast %cst_35 : f32 to vector<8x1xf32>
    %60 = arith.addf %58, %59 : vector<8x1xf32>
    %61 = math.rsqrt %60 : vector<8x1xf32>
    %c0_36 = arith.constant 0 : index
    %c0_37 = arith.constant 0 : index
    %62 = vector.load %arg3[%c0_36, %c0_37] : memref<8x1xf32, #tpu.memory_space<vmem>>, vector<8x1xf32>
    %63 = arith.mulf %61, %62 : vector<8x1xf32>
    %64 = vector.broadcast %63 : vector<8x1xf32> to vector<8x128xf32>
    %65 = arith.mulf %53, %64 : vector<8x128xf32>
    %c0_38 = arith.constant 0 : index
    %c0_39 = arith.constant 0 : index
    %66 = vector.load %arg4[%c0_38, %c0_39] : memref<8x1xf32, #tpu.memory_space<vmem>>, vector<8x1xf32>
    %67 = vector.broadcast %66 : vector<8x1xf32> to vector<8x128xf32>
    %68 = arith.addf %65, %67 : vector<8x128xf32>
    %cst_40 = arith.constant 0.000000e+00 : f32
    %69 = vector.broadcast %cst_40 : f32 to vector<8x128xf32>
    %70 = arith.maximumf %68, %69 : vector<8x128xf32>
    %71 = arith.truncf %70 : vector<8x128xf32> to vector<8x128xbf16>
    %c0_41 = arith.constant 0 : index
    %c0_42 = arith.constant 0 : index
    %72 = vector.load %arg5[%c0_41, %c0_42] : memref<144x8xbf16, #tpu.memory_space<vmem>>, vector<144x8xbf16>
    %cst_43 = arith.constant dense<0.000000e+00> : vector<144x128xf32>
    %73 = tpu.matmul %72, %71, %cst_43 {dimension_numbers = #tpu.dot_dimension_numbers<[1], [0], [0], [1], [0, 0, 1, 1], [], []>} : vector<144x8xbf16>, vector<8x128xbf16>, vector<144x128xf32> -> vector<144x128xf32>
    %74 = arith.truncf %73 : vector<144x128xf32> to vector<144x128xbf16>
    %75 = vector.extract_strided_slice %74 {offsets = [0, 0], sizes = [16, 128], strides = [1, 1]} : vector<144x128xbf16> to vector<16x128xbf16>
    %c0_44 = arith.constant 0 : index
    %c0_45 = arith.constant 0 : index
    %c0_46 = arith.constant 0 : index
    %76 = vector.load %arg6[%c0_44, %c0_45, %c0_46] : memref<9x128x32xbf16, #tpu.memory_space<vmem>>, vector<1x128x32xbf16>
    %77 = vector.shape_cast %76 : vector<1x128x32xbf16> to vector<128x32xbf16>
    %cst_47 = arith.constant dense<0.000000e+00> : vector<16x32xf32>
    %78 = tpu.matmul %75, %77, %cst_47 {dimension_numbers = #tpu.dot_dimension_numbers<[1], [0], [0], [1], [0, 0, 1, 1], [], []>} : vector<16x128xbf16>, vector<128x32xbf16>, vector<16x32xf32> -> vector<16x32xf32>
    %79 = vector.extract_strided_slice %74 {offsets = [16, 0], sizes = [16, 128], strides = [1, 1]} : vector<144x128xbf16> to vector<16x128xbf16>
    %c1_48 = arith.constant 1 : index
    %c0_49 = arith.constant 0 : index
    %c0_50 = arith.constant 0 : index
    %80 = vector.load %arg6[%c1_48, %c0_49, %c0_50] : memref<9x128x32xbf16, #tpu.memory_space<vmem>>, vector<1x128x32xbf16>
    %81 = vector.shape_cast %80 : vector<1x128x32xbf16> to vector<128x32xbf16>
    %cst_51 = arith.constant dense<0.000000e+00> : vector<16x32xf32>
    %82 = tpu.matmul %79, %81, %cst_51 {dimension_numbers = #tpu.dot_dimension_numbers<[1], [0], [0], [1], [0, 0, 1, 1], [], []>} : vector<16x128xbf16>, vector<128x32xbf16>, vector<16x32xf32> -> vector<16x32xf32>
    %83 = arith.addf %78, %82 : vector<16x32xf32>
    %84 = vector.extract_strided_slice %74 {offsets = [32, 0], sizes = [16, 128], strides = [1, 1]} : vector<144x128xbf16> to vector<16x128xbf16>
    %c2_52 = arith.constant 2 : index
    %c0_53 = arith.constant 0 : index
    %c0_54 = arith.constant 0 : index
    %85 = vector.load %arg6[%c2_52, %c0_53, %c0_54] : memref<9x128x32xbf16, #tpu.memory_space<vmem>>, vector<1x128x32xbf16>
    %86 = vector.shape_cast %85 : vector<1x128x32xbf16> to vector<128x32xbf16>
    %cst_55 = arith.constant dense<0.000000e+00> : vector<16x32xf32>
    %87 = tpu.matmul %84, %86, %cst_55 {dimension_numbers = #tpu.dot_dimension_numbers<[1], [0], [0], [1], [0, 0, 1, 1], [], []>} : vector<16x128xbf16>, vector<128x32xbf16>, vector<16x32xf32> -> vector<16x32xf32>
    %88 = arith.addf %83, %87 : vector<16x32xf32>
    %89 = vector.extract_strided_slice %74 {offsets = [48, 0], sizes = [16, 128], strides = [1, 1]} : vector<144x128xbf16> to vector<16x128xbf16>
    %c3_56 = arith.constant 3 : index
    %c0_57 = arith.constant 0 : index
    %c0_58 = arith.constant 0 : index
    %90 = vector.load %arg6[%c3_56, %c0_57, %c0_58] : memref<9x128x32xbf16, #tpu.memory_space<vmem>>, vector<1x128x32xbf16>
    %91 = vector.shape_cast %90 : vector<1x128x32xbf16> to vector<128x32xbf16>
    %cst_59 = arith.constant dense<0.000000e+00> : vector<16x32xf32>
    %92 = tpu.matmul %89, %91, %cst_59 {dimension_numbers = #tpu.dot_dimension_numbers<[1], [0], [0], [1], [0, 0, 1, 1], [], []>} : vector<16x128xbf16>, vector<128x32xbf16>, vector<16x32xf32> -> vector<16x32xf32>
    %93 = arith.addf %88, %92 : vector<16x32xf32>
    %94 = vector.extract_strided_slice %74 {offsets = [64, 0], sizes = [16, 128], strides = [1, 1]} : vector<144x128xbf16> to vector<16x128xbf16>
    %c4_60 = arith.constant 4 : index
    %c0_61 = arith.constant 0 : index
    %c0_62 = arith.constant 0 : index
    %95 = vector.load %arg6[%c4_60, %c0_61, %c0_62] : memref<9x128x32xbf16, #tpu.memory_space<vmem>>, vector<1x128x32xbf16>
    %96 = vector.shape_cast %95 : vector<1x128x32xbf16> to vector<128x32xbf16>
    %cst_63 = arith.constant dense<0.000000e+00> : vector<16x32xf32>
    %97 = tpu.matmul %94, %96, %cst_63 {dimension_numbers = #tpu.dot_dimension_numbers<[1], [0], [0], [1], [0, 0, 1, 1], [], []>} : vector<16x128xbf16>, vector<128x32xbf16>, vector<16x32xf32> -> vector<16x32xf32>
    %98 = arith.addf %93, %97 : vector<16x32xf32>
    %99 = vector.extract_strided_slice %74 {offsets = [80, 0], sizes = [16, 128], strides = [1, 1]} : vector<144x128xbf16> to vector<16x128xbf16>
    %c5_64 = arith.constant 5 : index
    %c0_65 = arith.constant 0 : index
    %c0_66 = arith.constant 0 : index
    %100 = vector.load %arg6[%c5_64, %c0_65, %c0_66] : memref<9x128x32xbf16, #tpu.memory_space<vmem>>, vector<1x128x32xbf16>
    %101 = vector.shape_cast %100 : vector<1x128x32xbf16> to vector<128x32xbf16>
    %cst_67 = arith.constant dense<0.000000e+00> : vector<16x32xf32>
    %102 = tpu.matmul %99, %101, %cst_67 {dimension_numbers = #tpu.dot_dimension_numbers<[1], [0], [0], [1], [0, 0, 1, 1], [], []>} : vector<16x128xbf16>, vector<128x32xbf16>, vector<16x32xf32> -> vector<16x32xf32>
    %103 = arith.addf %98, %102 : vector<16x32xf32>
    %104 = vector.extract_strided_slice %74 {offsets = [96, 0], sizes = [16, 128], strides = [1, 1]} : vector<144x128xbf16> to vector<16x128xbf16>
    %c6_68 = arith.constant 6 : index
    %c0_69 = arith.constant 0 : index
    %c0_70 = arith.constant 0 : index
    %105 = vector.load %arg6[%c6_68, %c0_69, %c0_70] : memref<9x128x32xbf16, #tpu.memory_space<vmem>>, vector<1x128x32xbf16>
    %106 = vector.shape_cast %105 : vector<1x128x32xbf16> to vector<128x32xbf16>
    %cst_71 = arith.constant dense<0.000000e+00> : vector<16x32xf32>
    %107 = tpu.matmul %104, %106, %cst_71 {dimension_numbers = #tpu.dot_dimension_numbers<[1], [0], [0], [1], [0, 0, 1, 1], [], []>} : vector<16x128xbf16>, vector<128x32xbf16>, vector<16x32xf32> -> vector<16x32xf32>
    %108 = arith.addf %103, %107 : vector<16x32xf32>
    %109 = vector.extract_strided_slice %74 {offsets = [112, 0], sizes = [16, 128], strides = [1, 1]} : vector<144x128xbf16> to vector<16x128xbf16>
    %c7_72 = arith.constant 7 : index
    %c0_73 = arith.constant 0 : index
    %c0_74 = arith.constant 0 : index
    %110 = vector.load %arg6[%c7_72, %c0_73, %c0_74] : memref<9x128x32xbf16, #tpu.memory_space<vmem>>, vector<1x128x32xbf16>
    %111 = vector.shape_cast %110 : vector<1x128x32xbf16> to vector<128x32xbf16>
    %cst_75 = arith.constant dense<0.000000e+00> : vector<16x32xf32>
    %112 = tpu.matmul %109, %111, %cst_75 {dimension_numbers = #tpu.dot_dimension_numbers<[1], [0], [0], [1], [0, 0, 1, 1], [], []>} : vector<16x128xbf16>, vector<128x32xbf16>, vector<16x32xf32> -> vector<16x32xf32>
    %113 = arith.addf %108, %112 : vector<16x32xf32>
    %114 = vector.extract_strided_slice %74 {offsets = [128, 0], sizes = [16, 128], strides = [1, 1]} : vector<144x128xbf16> to vector<16x128xbf16>
    %c8_76 = arith.constant 8 : index
    %c0_77 = arith.constant 0 : index
    %c0_78 = arith.constant 0 : index
    %115 = vector.load %arg6[%c8_76, %c0_77, %c0_78] : memref<9x128x32xbf16, #tpu.memory_space<vmem>>, vector<1x128x32xbf16>
    %116 = vector.shape_cast %115 : vector<1x128x32xbf16> to vector<128x32xbf16>
    %cst_79 = arith.constant dense<0.000000e+00> : vector<16x32xf32>
    %117 = tpu.matmul %114, %116, %cst_79 {dimension_numbers = #tpu.dot_dimension_numbers<[1], [0], [0], [1], [0, 0, 1, 1], [], []>} : vector<16x128xbf16>, vector<128x32xbf16>, vector<16x32xf32> -> vector<16x32xf32>
    %118 = arith.addf %113, %117 : vector<16x32xf32>
    %cst_80 = arith.constant dense<0.000000e+00> : vector<16xf32>
    %119 = vector.multi_reduction <add>, %118, %cst_80 [1] : vector<16x32xf32> to vector<16xf32>
    %120 = vector.shape_cast %119 : vector<16xf32> to vector<16x1xf32>
    %cst_81 = arith.constant 3.125000e-02 : f32
    %121 = vector.broadcast %cst_81 : f32 to vector<16x1xf32>
    %122 = arith.mulf %120, %121 : vector<16x1xf32>
    %123 = vector.broadcast %122 : vector<16x1xf32> to vector<16x32xf32>
    %124 = arith.subf %118, %123 : vector<16x32xf32>
    %125 = arith.mulf %124, %124 : vector<16x32xf32>
    %cst_82 = arith.constant dense<0.000000e+00> : vector<16xf32>
    %126 = vector.multi_reduction <add>, %125, %cst_82 [1] : vector<16x32xf32> to vector<16xf32>
    %127 = vector.shape_cast %126 : vector<16xf32> to vector<16x1xf32>
    %cst_83 = arith.constant 3.125000e-02 : f32
    %128 = vector.broadcast %cst_83 : f32 to vector<16x1xf32>
    %129 = arith.mulf %127, %128 : vector<16x1xf32>
    %cst_84 = arith.constant 9.99999974E-6 : f32
    %130 = vector.broadcast %cst_84 : f32 to vector<16x1xf32>
    %131 = arith.addf %129, %130 : vector<16x1xf32>
    %132 = math.rsqrt %131 : vector<16x1xf32>
    %c0_85 = arith.constant 0 : index
    %c0_86 = arith.constant 0 : index
    %133 = vector.load %arg7[%c0_85, %c0_86] : memref<16x1xf32, #tpu.memory_space<vmem>>, vector<16x1xf32>
    %134 = arith.mulf %132, %133 : vector<16x1xf32>
    %135 = vector.broadcast %134 : vector<16x1xf32> to vector<16x32xf32>
    %136 = arith.mulf %124, %135 : vector<16x32xf32>
    %c0_87 = arith.constant 0 : index
    %c0_88 = arith.constant 0 : index
    %137 = vector.load %arg8[%c0_87, %c0_88] : memref<16x1xf32, #tpu.memory_space<vmem>>, vector<16x1xf32>
    %138 = vector.broadcast %137 : vector<16x1xf32> to vector<16x32xf32>
    %139 = arith.addf %136, %138 : vector<16x32xf32>
    %cst_89 = arith.constant 0.000000e+00 : f32
    %140 = vector.broadcast %cst_89 : f32 to vector<16x32xf32>
    %141 = arith.maximumf %139, %140 : vector<16x32xf32>
    %c0_90 = arith.constant 0 : index
    %c0_91 = arith.constant 0 : index
    %142 = vector.load %arg9[%c0_90, %c0_91] : memref<16x32xf32, #tpu.memory_space<vmem>>, vector<16x32xf32>
    tpu.vector_store %arg9[%c0_90, %c0_91], %141 {strides = array<i32>} : memref<16x32xf32, #tpu.memory_space<vmem>>, vector<16x32xf32>,
    return
  }
}

</mosaic_0001>

<bundles_post_ra>
// kernel: cnn_forward.1
= control target key start
LH: loop header
LB: loop body
LE: loop exit
PB: predicated region body
PF: predicated region fallthrough
CT: control target
= control target key end

     0   :  { %14 = vsyncpa [#allocation3], 0  ;;  %s6442_s0 = inlined_call_operand.vmem [shape: bf16[3,512], index: 0, kind: input, shape index: {}]   ;;  %s6443_s1 = inlined_call_operand.vmem [shape: bf16[72,3], index: 1, kind: input, shape index: {}]   ;;  %s6444_s2 = inlined_call_operand.hbm [shape: bf16[9,512,128], index: 2, kind: input, shape index: {}]   ;;  %s6445_s3 = inlined_call_operand.vmem [shape: f32[8,1], index: 3, kind: input, shape index: {}]   ;;  %s6446_s4 = inlined_call_operand.vmem [shape: f32[8,1], index: 4, kind: input, shape index: {}]   ;;  %s6447_s5 = inlined_call_operand.vmem [shape: bf16[144,8], index: 5, kind: input, shape index: {}]   ;;  %s6448_s6 = inlined_call_operand.hbm [shape: bf16[9,128,32], index: 6, kind: input, shape index: {}]   ;;  %s6449_s7 = inlined_call_operand.vmem [shape: f32[16,1], index: 7, kind: input, shape index: {}]   ;;  %s6450_s8 = inlined_call_operand.vmem [shape: f32[16,1], index: 8, kind: input, shape index: {}]   ;;  %s6451_s9 = inlined_call_operand.vmem [shape: f32[16,32], index: 9, kind: output, shape index: {}]  }
   0x1   :  { %s24_s11 = sshll.u32 %s6444_s2, 4  ;;  %s25_s11 = int_to_ptr.hbm [resolvable:$true] %s24_s11 }
   0x2   :  { %15 = vsyncpa [#allocation5], 0  ;;  %s6221_s12 = smov [#allocation2]   ;;  %s43_s16 = sshll.u32 %s6448_s6, 4  ;;  %s44_s16 = int_to_ptr.hbm [resolvable:$true] %s43_s16 }
   0x3   :  { %s26_s13 = sshll.u32 %s6221_s12, 4  ;;  %s6222_s17 = smov 64   ;;  %s27_s13 = int_to_ptr.vmem [resolvable:$true] %s26_s13 }
   0x4   :  { %s6223_s18 = smov 4   ;;  %s6224_s19 = smov [#allocation4]  }
   0x5   :  { %32 = dma.hbm_to_vmem [thread:$0]  %s25_s11, 36864, %s27_s13, [#allocation3], %s6222_s17, %s6222_s17, %s6223_s18  }
   0x6   :  { %s45_s20 = sshll.u32 %s6224_s19, 4  ;;  %s46_s20 = int_to_ptr.vmem [resolvable:$true] %s45_s20 }
   0x7   :  { %51 = dma.hbm_to_vmem [thread:$0]  %s44_s16, 9216, %s46_s20, [#allocation5], %s6222_s17, %s6222_s17, %s6223_s18  }
   0x8   :  { %6217 = dma.done.wait [#allocation3], 36864  }
   0x9   :  { %6218 = vsyncadd [#allocation3], 4294930432 }
   0xa   :  { %6219 = dma.done.wait [#allocation5], 9216  }
   0xb   :  { %6220 = vsyncadd [#allocation5], 4294958080  ;;  %v65_v0 = vld [vmem:[%s6442_s0] sm:$0xff]  ;;  %vm120_vm0 = vcmask 1040384   ;;  %vm121_vm1 = vcmask 1041408   ;;  %v6225_v1 = vmov 65535  }
   0xc   :  { %99 = vst [vmem:[#allocation1] ss:$4 sm:$0xff] %v65_v0  ;;  %v122_v2 = vsel %vm120_vm0, 4294967295, %v6225_v1  ;;  %v5823_v4 = vld [vmem:[#allocation2 + $0x138] sm:$0xff]  ;;  %vm104_vm2 = vcmask 23552   ;;  %v5822_v17 = vld [vmem:[#allocation2 + $0x130] sm:$0xff] }
   0xd   :  { %v123_v3 = vsel %vm121_vm1, %v122_v2, 0  ;;  %v5831_v5 = vld [vmem:[#allocation2 + $0x178] sm:$0xff]  ;;  %v5830_v18 = vld [vmem:[#allocation2 + $0x170] sm:$0xff]  ;;  %v5821_v21 = vld [vmem:[#allocation2 + $0x128] sm:$0xff]  ;;  %vm3322_vm6 = vcmask 1043456   ;;  %vm3294_vm7 = vcmask 64512  }
   0xe   :  { %v5780_v14 = vld [vmem:[%s6443_s1] sm:$0xff]  ;;  %v5838_v19 = vld [vmem:[#allocation2 + $0x1b0] sm:$0xff]  ;;  %v5829_v22 = vld [vmem:[#allocation2 + $0x168] sm:$0xff]  ;;  %vm4176_vm8 = vcmask 261120  }
   0xf   :  { %v5839_v15 = vld [vmem:[#allocation2 + $0x1b8] sm:$0xff]  ;;  %v5846_v20 = vld [vmem:[#allocation2 + $0x1f0] sm:$0xff]  ;;  %v5837_v23 = vld [vmem:[#allocation2 + $0x1a8] sm:$0xff] }
  0x10   :  { %v5847_v16 = vld [vmem:[#allocation2 + $0x1f8] sm:$0xff]  ;;  %v5845_v24 = vld [vmem:[#allocation2 + $0x1e8] sm:$0xff]  ;;  %v5820_v25 = vld [vmem:[#allocation2 + $0x120] sm:$0xff] }
  0x11   :  { %v5828_v26 = vld [vmem:[#allocation2 + $0x160] sm:$0xff]  ;;  %v5819_v29 = vld [vmem:[#allocation2 + $0x118] sm:$0xff]  ;;  %v5818_v34 = vld [vmem:[#allocation2 + $0x110] sm:$0xff] }
  0x12   :  { %v5836_v27 = vld [vmem:[#allocation2 + $0x1a0] sm:$0xff]  ;;  %v5827_v30 = vld [vmem:[#allocation2 + $0x158] sm:$0xff]  ;;  %v5826_v35 = vld [vmem:[#allocation2 + $0x150] sm:$0xff] }
  0x13   :  { %v100_v6 = vld.sshfl [vmem:[#allocation1] sm:$0xff pattern:$0x73625140]  ;;  %v101_v7 = vld.sshfl [vmem:[#allocation1 + $0x8] sm:$0xff pattern:$0x73625140] }
  0x14   :  { %v124_v8 = vand.u32 %v123_v3, %v100_v6  ;;  %v126_v9 = vand.u32 %v123_v3, %v101_v7  ;;  %v102_v10 = vld.sshfl [vmem:[#allocation1 + $0x10] sm:$0xff pattern:$0x73625140]  ;;  %v103_v11 = vld.sshfl [vmem:[#allocation1 + $0x18] sm:$0xff pattern:$0x73625140] }
  0x15   :  { %v128_v12 = vand.u32 %v123_v3, %v102_v10  ;;  %v130_v13 = vand.u32 %v123_v3, %v103_v11  ;;  %v5844_v28 = vld [vmem:[#allocation2 + $0x1e0] sm:$0xff]  ;;  %v5835_v32 = vld [vmem:[#allocation2 + $0x198] sm:$0xff]  ;;  %v5834_v36 = vld [vmem:[#allocation2 + $0x190] sm:$0xff] }
  0x16   :  { %139 = vmatpush.bf16.msra.mxu0 %v124_v8  ;;  %172 = vmatpush.bf16.msra.mxu1 %v126_v9  ;;  %v5781_v31 = vld [vmem:[%s6443_s1 + $0x8] sm:$0xff]  ;;  %v5843_v33 = vld [vmem:[#allocation2 + $0x1d8] sm:$0xff]  ;;  %v5842_v37 = vld [vmem:[#allocation2 + $0x1d0] sm:$0xff] }
  0x17   :  { %205 = vmatpush.bf16.msra.mxu2 %v128_v12  ;;  %238 = vmatpush.bf16.msra.mxu3 %v130_v13  ;;  %v5817_v38 = vld [vmem:[#allocation2 + $0x108] sm:$0xff]  ;;  %v5816_v42 = vld [vmem:[#allocation2 + $0x100] sm:$0xff]  ;;  %v5791_v44 = vld [vmem:[#allocation2 + $0x38] sm:$0xff] }
  0x18   :  { %v5825_v39 = vld [vmem:[#allocation2 + $0x148] sm:$0xff]  ;;  %v5824_v43 = vld [vmem:[#allocation2 + $0x140] sm:$0xff]  ;;  %v5799_v45 = vld [vmem:[#allocation2 + $0x78] sm:$0xff] }
  0x19   :  { %4275 = vmatmul.msk.bf16.vlgmr.msra.gmra.mxu0 %vm104_vm2, %v5780_v14  ;;  %4280 = vmatmul.msk.bf16.vlgmr.msra.gmra.mxu1 %vm104_vm2, %v5780_v14  ;;  %v5833_v40 = vld [vmem:[#allocation2 + $0x188] sm:$0xff]  ;;  %v5832_v46 = vld [vmem:[#allocation2 + $0x180] sm:$0xff]  ;;  %v5807_v48 = vld [vmem:[#allocation2 + $0xb8] sm:$0xff] }
  0x1a   :  { %617 = vmatpush.bf16.msrb.mxu0 %v5823_v4  ;;  %630 = vmatpush.bf16.msrb.mxu1 %v5831_v5  ;;  %v5841_v41 = vld [vmem:[#allocation2 + $0x1c8] sm:$0xff]  ;;  %v5840_v47 = vld [vmem:[#allocation2 + $0x1c0] sm:$0xff]  ;;  %v5815_v49 = vld [vmem:[#allocation2 + $0xf8] sm:$0xff] }
  0x1b   :  { %4285 = vmatmul.msk.bf16.vlgmr.msra.gmra.mxu2 %vm104_vm2, %v5780_v14  ;;  %4290 = vmatmul.msk.bf16.vlgmr.msra.gmra.mxu3 %vm104_vm2, %v5780_v14  ;;  %v5782_v50 = vld [vmem:[%s6443_s1 + $0x10] sm:$0xff]  ;;  %v5790_v51 = vld [vmem:[#allocation2 + $0x30] sm:$0xff]  ;;  %v5788_v57 = vld [vmem:[#allocation2 + $0x20] sm:$0xff] }
  0x1c   :  { %643 = vmatpush.bf16.msrb.mxu2 %v5839_v15  ;;  %656 = vmatpush.bf16.msrb.mxu3 %v5847_v16  ;;  %v5798_v52 = vld [vmem:[#allocation2 + $0x70] sm:$0xff]  ;;  %v5789_v55 = vld [vmem:[#allocation2 + $0x28] sm:$0xff]  ;;  %v5796_v58 = vld [vmem:[#allocation2 + $0x60] sm:$0xff] }
  0x1d   :  { %v5806_v53 = vld [vmem:[#allocation2 + $0xb0] sm:$0xff]  ;;  %v5797_v56 = vld [vmem:[#allocation2 + $0x68] sm:$0xff]  ;;  %v74_v60 = vld [vmem:[%s6443_s1 + $0x20] sm:$0xf] }
  0x1e   :  { %618 = vmatpush.bf16.msrb.mxu0 %v5822_v17  ;;  %631 = vmatpush.bf16.msrb.mxu1 %v5830_v18  ;;  %v5814_v54 = vld [vmem:[#allocation2 + $0xf0] sm:$0xff]  ;;  %v92_v61 = vunpack.c.l.b16 %v74_v60  ;;  %v5805_v63 = vld [vmem:[#allocation2 + $0xa8] sm:$0xff]  ;;  %v5787_v1 = vld [vmem:[#allocation2 + $0x18] sm:$0xff] }
  0x1f   :  { %v5783_v59 = vld [vmem:[%s6443_s1 + $0x18] sm:$0xff]  ;;  %v5813_v0 = vld [vmem:[#allocation2 + $0xe8] sm:$0xff]  ;;  %v5795_v2 = vld [vmem:[#allocation2 + $0x58] sm:$0xff] }
  0x20   :  { %644 = vmatpush.bf16.msrb.mxu2 %v5838_v19  ;;  %657 = vmatpush.bf16.msrb.mxu3 %v5846_v20  ;;  %v97_v62 = vpack.c.b16 %v92_v61, %v92_v61  ;;  %v5804_v3 = vld [vmem:[#allocation2 + $0xa0] sm:$0xff]  ;;  %v5786_v5 = vld [vmem:[#allocation2 + $0x10] sm:$0xff]  ;;  %v5803_v7 = vld [vmem:[#allocation2 + $0x98] sm:$0xff] }
  0x21   :  { %v5812_v4 = vld [vmem:[#allocation2 + $0xe0] sm:$0xff]  ;;  %v5794_v6 = vld [vmem:[#allocation2 + $0x50] sm:$0xff]  ;;  %v5811_v8 = vld [vmem:[#allocation2 + $0xd8] sm:$0xff] }
  0x22   :  { %619 = vmatpush.bf16.msrb.mxu0 %v5821_v21  ;;  %632 = vmatpush.bf16.msrb.mxu1 %v5829_v22  ;;  %v5785_v9 = vld [vmem:[#allocation2 + $0x8] sm:$0xff]  ;;  %v5802_v11 = vld [vmem:[#allocation2 + $0x90] sm:$0xff]  ;;  %v5784_v13 = vld [vmem:[#allocation2] sm:$0xff] }
  0x23   :  { %v5793_v10 = vld [vmem:[#allocation2 + $0x48] sm:$0xff]  ;;  %v5810_v12 = vld [vmem:[#allocation2 + $0xd0] sm:$0xff]  ;;  %v5792_v14 = vld [vmem:[#allocation2 + $0x40] sm:$0xff] }
  0x24   :  { %645 = vmatpush.bf16.msrb.mxu2 %v5837_v23  ;;  %658 = vmatpush.bf16.msrb.mxu3 %v5845_v24  ;;  %v5801_v15 = vld [vmem:[#allocation2 + $0x88] sm:$0xff]  ;;  %v5800_v17 = vld [vmem:[#allocation2 + $0x80] sm:$0xff] }
  0x25   :  { %v5809_v16 = vld [vmem:[#allocation2 + $0xc8] sm:$0xff]  ;;  %v5808_v18 = vld [vmem:[#allocation2 + $0xc0] sm:$0xff] }
  0x26   :  { %620 = vmatpush.bf16.msrb.mxu0 %v5820_v25  ;;  %633 = vmatpush.bf16.msrb.mxu1 %v5828_v26  ;;  %v5876_v60 = vld [vmem:[#allocation2 + $0x2e0] sm:$0xff] }
  0x28   :  { %646 = vmatpush.bf16.msrb.mxu2 %v5836_v27  ;;  %659 = vmatpush.bf16.msrb.mxu3 %v5844_v28  ;;  %v5855_v28 = vld [vmem:[#allocation2 + $0x238] sm:$0xff] }
  0x29   :  { %4276 = vmatmul.msk.bf16.gmra.mxu0 %vm104_vm2, %v5781_v31  ;;  %4281 = vmatmul.msk.bf16.gmra.mxu1 %vm104_vm2, %v5781_v31 }
  0x2a   :  { %621 = vmatpush.bf16.msrb.mxu0 %v5819_v29  ;;  %634 = vmatpush.bf16.msrb.mxu1 %v5827_v30  ;;  %v5863_v29 = vld [vmem:[#allocation2 + $0x278] sm:$0xff] }
  0x2b   :  { %4286 = vmatmul.msk.bf16.gmra.mxu2 %vm104_vm2, %v5781_v31  ;;  %4291 = vmatmul.msk.bf16.gmra.mxu3 %vm104_vm2, %v5781_v31 }
  0x2c   :  { %647 = vmatpush.bf16.msrb.mxu2 %v5835_v32  ;;  %660 = vmatpush.bf16.msrb.mxu3 %v5843_v33 }
  0x2e   :  { %622 = vmatpush.bf16.msrb.mxu0 %v5818_v34  ;;  %635 = vmatpush.bf16.msrb.mxu1 %v5826_v35  ;;  %v5854_v35 = vld [vmem:[#allocation2 + $0x230] sm:$0xff] }
  0x30   :  { %648 = vmatpush.bf16.msrb.mxu2 %v5834_v36  ;;  %661 = vmatpush.bf16.msrb.mxu3 %v5842_v37  ;;  %v5862_v36 = vld [vmem:[#allocation2 + $0x270] sm:$0xff] }
  0x32   :  { %623 = vmatpush.bf16.msrb.mxu0 %v5817_v38  ;;  %636 = vmatpush.bf16.msrb.mxu1 %v5825_v39  ;;  %v5871_v39 = vld [vmem:[#allocation2 + $0x2b8] sm:$0xff] }
  0x34   :  { %649 = vmatpush.bf16.msrb.mxu2 %v5833_v40  ;;  %662 = vmatpush.bf16.msrb.mxu3 %v5841_v41  ;;  %v5879_v40 = vld [vmem:[#allocation2 + $0x2f8] sm:$0xff] }
  0x36   :  { %624 = vmatpush.bf16.msrb.mxu0 %v5816_v42  ;;  %637 = vmatpush.bf16.msrb.mxu1 %v5824_v43  ;;  %v5853_v43 = vld [vmem:[#allocation2 + $0x228] sm:$0xff] }
  0x38   :  { %650 = vmatpush.bf16.msrb.mxu2 %v5832_v46  ;;  %663 = vmatpush.bf16.msrb.mxu3 %v5840_v47  ;;  %v5870_v46 = vld [vmem:[#allocation2 + $0x2b0] sm:$0xff] }
  0x39   :  { %4277 = vmatmul.msk.bf16.gmra.mxu0 %vm104_vm2, %v5782_v50  ;;  %4282 = vmatmul.msk.bf16.gmra.mxu1 %vm104_vm2, %v5782_v50  ;;  %v5878_v47 = vld [vmem:[#allocation2 + $0x2f0] sm:$0xff] }
  0x3a   :  { %875 = vmatpush.bf16.msra.mxu0 %v5791_v44  ;;  %888 = vmatpush.bf16.msra.mxu1 %v5799_v45  ;;  %v5861_v44 = vld [vmem:[#allocation2 + $0x268] sm:$0xff] }
  0x3b   :  { %4287 = vmatmul.msk.bf16.gmra.mxu2 %vm104_vm2, %v5782_v50  ;;  %4292 = vmatmul.msk.bf16.gmra.mxu3 %vm104_vm2, %v5782_v50 }
  0x3c   :  { %901 = vmatpush.bf16.msra.mxu2 %v5807_v48  ;;  %914 = vmatpush.bf16.msra.mxu3 %v5815_v49  ;;  %v5852_v48 = vld [vmem:[#allocation2 + $0x220] sm:$0xff] }
  0x3d   :  { %v5860_v49 = vld [vmem:[#allocation2 + $0x260] sm:$0xff] }
  0x3e   :  { %876 = vmatpush.bf16.msra.mxu0 %v5790_v51  ;;  %889 = vmatpush.bf16.msra.mxu1 %v5798_v52  ;;  %v5869_v52 = vld [vmem:[#allocation2 + $0x2a8] sm:$0xff] }
  0x40   :  { %902 = vmatpush.bf16.msra.mxu2 %v5806_v53  ;;  %915 = vmatpush.bf16.msra.mxu3 %v5814_v54  ;;  %v5877_v53 = vld [vmem:[#allocation2 + $0x2e8] sm:$0xff] }
  0x42   :  { %877 = vmatpush.bf16.msra.mxu0 %v5789_v55  ;;  %890 = vmatpush.bf16.msra.mxu1 %v5797_v56  ;;  %v5851_v55 = vld [vmem:[#allocation2 + $0x218] sm:$0xff] }
  0x43   :  { %v5859_v56 = vld [vmem:[#allocation2 + $0x258] sm:$0xff] }
  0x44   :  { %903 = vmatpush.bf16.msra.mxu2 %v5805_v63  ;;  %916 = vmatpush.bf16.msra.mxu3 %v5813_v0  ;;  %v5850_v63 = vld [vmem:[#allocation2 + $0x210] sm:$0xff] }
  0x45   :  { %v5858_v0 = vld [vmem:[#allocation2 + $0x250] sm:$0xff] }
  0x46   :  { %878 = vmatpush.bf16.msra.mxu0 %v5788_v57  ;;  %891 = vmatpush.bf16.msra.mxu1 %v5796_v58 }
  0x48   :  { %904 = vmatpush.bf16.msra.mxu2 %v5804_v3  ;;  %917 = vmatpush.bf16.msra.mxu3 %v5812_v4  ;;  %v5867_v3 = vld [vmem:[#allocation2 + $0x298] sm:$0xff] }
  0x49   :  { %4278 = vmatmul.msk.bf16.gmra.mxu0 %vm104_vm2, %v5783_v59  ;;  %4283 = vmatmul.msk.bf16.gmra.mxu1 %vm104_vm2, %v5783_v59  ;;  %v5875_v4 = vld [vmem:[#allocation2 + $0x2d8] sm:$0xff] }
  0x4a   :  { %879 = vmatpush.bf16.msra.mxu0 %v5787_v1  ;;  %892 = vmatpush.bf16.msra.mxu1 %v5795_v2 }
  0x4b   :  { %4288 = vmatmul.msk.bf16.gmra.mxu2 %vm104_vm2, %v5783_v59  ;;  %4293 = vmatmul.msk.bf16.gmra.mxu3 %vm104_vm2, %v5783_v59  ;;  %v5868_v59 = vld [vmem:[#allocation2 + $0x2a0] sm:$0xff] }
  0x4c   :  { %905 = vmatpush.bf16.msra.mxu2 %v5803_v7  ;;  %918 = vmatpush.bf16.msra.mxu3 %v5811_v8  ;;  %v5849_v8 = vld [vmem:[#allocation2 + $0x208] sm:$0xff] }
  0x4e   :  { %880 = vmatpush.bf16.msra.mxu0 %v5786_v5  ;;  %893 = vmatpush.bf16.msra.mxu1 %v5794_v6 }
  0x50   :  { %906 = vmatpush.bf16.msra.mxu2 %v5802_v11  ;;  %919 = vmatpush.bf16.msra.mxu3 %v5810_v12  ;;  %v5874_v11 = vld [vmem:[#allocation2 + $0x2d0] sm:$0xff] }
  0x52   :  { %881 = vmatpush.bf16.msra.mxu0 %v5785_v9  ;;  %894 = vmatpush.bf16.msra.mxu1 %v5793_v10  ;;  %v5857_v9 = vld [vmem:[#allocation2 + $0x248] sm:$0xff]  ;;  %v5866_v10 = vld [vmem:[#allocation2 + $0x290] sm:$0xff] }
  0x54   :  { %907 = vmatpush.bf16.msra.mxu2 %v5801_v15  ;;  %920 = vmatpush.bf16.msra.mxu3 %v5809_v16  ;;  %v5848_v16 = vld [vmem:[#allocation2 + $0x200] sm:$0xff] }
  0x56   :  { %882 = vmatpush.bf16.msra.mxu0 %v5784_v13  ;;  %895 = vmatpush.bf16.msra.mxu1 %v5792_v14 }
  0x58   :  { %908 = vmatpush.bf16.msra.mxu2 %v5800_v17  ;;  %921 = vmatpush.bf16.msra.mxu3 %v5808_v18  ;;  %v5856_v17 = vld [vmem:[#allocation2 + $0x240] sm:$0xff]  ;;  %v5887_v18 = vld [vmem:[#allocation2 + $0x338] sm:$0xff] }
  0x59   :  { %4279 = vmatmul.msk.bf16.gmra.mxu0 %vm104_vm2, %v97_v62  ;;  %4284 = vmatmul.msk.bf16.gmra.mxu1 %vm104_vm2, %v97_v62 }
  0x5b   :  { %4289 = vmatmul.msk.bf16.gmra.mxu2 %vm104_vm2, %v97_v62  ;;  %4294 = vmatmul.msk.bf16.gmra.mxu3 %vm104_vm2, %v97_v62 }
  0x96   :  { %v141_v19 = vpop.f32.mrf.mxu0  ;;  %v174_v20 = vpop.f32.mrf.mxu1 }
  0x97   :  { %v264_v45 = vpack.c.bf16 %v174_v20, %v141_v19  ;;  %v5895_v19 = vld [vmem:[#allocation2 + $0x378] sm:$0xff]  ;;  %v5865_v20 = vld [vmem:[#allocation2 + $0x288] sm:$0xff] }
  0x99   :  { %v671_v50 = vunpack.c.l.b16 %v264_v45  ;;  %v672_v51 = vunpack.c.h.b16 %v264_v45 }
  0x9b   :  { %v675_v57 = vpack.c.b16 %v671_v50, %v671_v50  ;;  %v676_v58 = vpack.c.b16 %v672_v51, %v672_v51  ;;  %v5908_v50 = vld [vmem:[#allocation2 + $0x3e0] sm:$0xff] }
  0x9e   :  { %v207_v21 = vpop.f32.mrf.mxu2  ;;  %v240_v22 = vpop.f32.mrf.mxu3 }
  0x9f   :  { %v143_v23 = vpop.f32.mrf.mxu0  ;;  %v176_v24 = vpop.f32.mrf.mxu1  ;;  %v265_v54 = vpack.c.bf16 %v240_v22, %v207_v21  ;;  %v5873_v21 = vld [vmem:[#allocation2 + $0x2c8] sm:$0xff] }
  0xa0   :  { %v266_v25 = vpack.c.bf16 %v176_v24, %v143_v23 }
  0xa1   :  { %v673_v61 = vunpack.c.l.b16 %v265_v54  ;;  %v674_v62 = vunpack.c.h.b16 %v265_v54  ;;  %v5890_v54 = vld [vmem:[#allocation2 + $0x350] sm:$0xff] }
  0xa2   :  { %v413_v26 = vunpack.c.l.b16 %v266_v25  ;;  %v414_v27 = vunpack.c.h.b16 %v266_v25  ;;  %v5886_v25 = vld [vmem:[#allocation2 + $0x330] sm:$0xff] }
  0xa3   :  { %v677_v5 = vpack.c.b16 %v673_v61, %v673_v61  ;;  %v678_v6 = vpack.c.b16 %v674_v62, %v674_v62  ;;  %v5889_v61 = vld [vmem:[#allocation2 + $0x348] sm:$0xff]  ;;  %v5898_v62 = vld [vmem:[#allocation2 + $0x390] sm:$0xff] }
  0xa4   :  { %v417_v30 = vpack.c.b16 %v413_v26, %v413_v26  ;;  %v418_v31 = vpack.c.b16 %v414_v27, %v414_v27  ;;  %v5894_v26 = vld [vmem:[#allocation2 + $0x370] sm:$0xff] }
  0xa6   :  { %v209_v32 = vpop.f32.mrf.mxu2  ;;  %v242_v33 = vpop.f32.mrf.mxu3  ;;  %625 = vmatmul.bf16.vlgmr.msrb.gmra.mxu0 %v417_v30  ;;  %638 = vmatmul.bf16.vlgmr.msrb.gmra.mxu1 %v418_v31  ;;  %v5872_v30 = vld [vmem:[#allocation2 + $0x2c0] sm:$0xff]  ;;  %v5903_v31 = vld [vmem:[#allocation2 + $0x3b8] sm:$0xff] }
  0xa7   :  { %v267_v34 = vpack.c.bf16 %v242_v33, %v209_v32  ;;  %1198 = vmatpush.bf16.msrb.mxu0 %v5855_v28  ;;  %1211 = vmatpush.bf16.msrb.mxu1 %v5863_v29  ;;  %v146_v1 = vpop.f32.mrf.mxu0  ;;  %v179_v2 = vpop.f32.mrf.mxu1  ;;  %v5864_v29 = vld [vmem:[#allocation2 + $0x280] sm:$0xff]  ;;  %v5911_v32 = vld [vmem:[#allocation2 + $0x3f8] sm:$0xff]  ;;  %v5885_v33 = vld [vmem:[#allocation2 + $0x328] sm:$0xff] }
  0xa8   :  { %v268_v7 = vpack.c.bf16 %v179_v2, %v146_v1 }
  0xa9   :  { %v415_v37 = vunpack.c.l.b16 %v267_v34  ;;  %v416_v38 = vunpack.c.h.b16 %v267_v34  ;;  %v5893_v34 = vld [vmem:[#allocation2 + $0x368] sm:$0xff] }
  0xaa   :  { %v994_v14 = vunpack.c.l.b16 %v268_v7  ;;  %v995_v15 = vunpack.c.h.b16 %v268_v7  ;;  %v5927_v7 = vld [vmem:[#allocation2 + $0x478] sm:$0xff] }
  0xab   :  { %1199 = vmatpush.bf16.msrb.mxu0 %v5854_v35  ;;  %1212 = vmatpush.bf16.msrb.mxu1 %v5862_v36  ;;  %v419_v41 = vpack.c.b16 %v415_v37, %v415_v37  ;;  %v420_v42 = vpack.c.b16 %v416_v38, %v416_v38  ;;  %v5902_v37 = vld [vmem:[#allocation2 + $0x3b0] sm:$0xff] }
  0xac   :  { %v998_v23 = vpack.c.b16 %v994_v14, %v994_v14  ;;  %v999_v24 = vpack.c.b16 %v995_v15, %v995_v15  ;;  %v5910_v38 = vld [vmem:[#allocation2 + $0x3f0] sm:$0xff] }
  0xad   :  { %651 = vmatmul.bf16.vlgmr.msrb.gmra.mxu2 %v419_v41  ;;  %664 = vmatmul.bf16.vlgmr.msrb.gmra.mxu3 %v420_v42  ;;  %v5884_v41 = vld [vmem:[#allocation2 + $0x320] sm:$0xff]  ;;  %v5918_v15 = vld [vmem:[#allocation2 + $0x430] sm:$0xff] }
  0xae   :  { %1224 = vmatpush.bf16.msrb.mxu2 %v5871_v39  ;;  %1237 = vmatpush.bf16.msrb.mxu3 %v5879_v40  ;;  %v212_v12 = vpop.f32.mrf.mxu2  ;;  %v245_v13 = vpop.f32.mrf.mxu3  ;;  %v5892_v42 = vld [vmem:[#allocation2 + $0x360] sm:$0xff] }
  0xaf   :  { %1200 = vmatpush.bf16.msrb.mxu0 %v5853_v43  ;;  %1213 = vmatpush.bf16.msrb.mxu1 %v5861_v44  ;;  %v269_v22 = vpack.c.bf16 %v245_v13, %v212_v12  ;;  %v148_v39 = vpop.f32.mrf.mxu0  ;;  %v181_v40 = vpop.f32.mrf.mxu1  ;;  %v5901_v43 = vld [vmem:[#allocation2 + $0x3a8] sm:$0xff] }
  0xb0   :  { %v5909_v44 = vld [vmem:[#allocation2 + $0x3e8] sm:$0xff] }
  0xb1   :  { %v996_v27 = vunpack.c.l.b16 %v269_v22  ;;  %v997_v28 = vunpack.c.h.b16 %v269_v22  ;;  %v5943_v22 = vld [vmem:[#allocation2 + $0x4f8] sm:$0xff] }
  0xb2   :  { %1225 = vmatpush.bf16.msrb.mxu2 %v5870_v46  ;;  %1238 = vmatpush.bf16.msrb.mxu3 %v5878_v47  ;;  %v5883_v47 = vld [vmem:[#allocation2 + $0x318] sm:$0xff] }
  0xb3   :  { %1201 = vmatpush.bf16.msrb.mxu0 %v5852_v48  ;;  %1214 = vmatpush.bf16.msrb.mxu1 %v5860_v49  ;;  %v1000_v35 = vpack.c.b16 %v996_v27, %v996_v27  ;;  %v1001_v36 = vpack.c.b16 %v997_v28, %v997_v28  ;;  %v5891_v48 = vld [vmem:[#allocation2 + $0x358] sm:$0xff]  ;;  %v5900_v49 = vld [vmem:[#allocation2 + $0x3a0] sm:$0xff]  ;;  %v5925_v27 = vld [vmem:[#allocation2 + $0x468] sm:$0xff] }
  0xb6   :  { %1226 = vmatpush.bf16.msrb.mxu2 %v5869_v52  ;;  %1239 = vmatpush.bf16.msrb.mxu3 %v5877_v53  ;;  %v214_v45 = vpop.f32.mrf.mxu2  ;;  %v247_v46 = vpop.f32.mrf.mxu3  ;;  %v5882_v53 = vld [vmem:[#allocation2 + $0x310] sm:$0xff] }
  0xb7   :  { %883 = vmatmul.bf16.vlgmr.msra.gmra.mxu0 %v675_v57  ;;  %896 = vmatmul.bf16.vlgmr.msra.gmra.mxu1 %v676_v58  ;;  %v6321_v51 = vpop.f32.mrf.mxu0  ;;  %v6323_v52 = vpop.f32.mrf.mxu1  ;;  %v270_v57 = vpack.c.bf16 %v181_v40, %v148_v39  ;;  %v271_v12 = vpack.c.bf16 %v247_v46, %v214_v45 }
  0xb8   :  { %1202 = vmatpush.bf16.msrb.mxu0 %v5851_v55  ;;  %1215 = vmatpush.bf16.msrb.mxu1 %v5859_v56  ;;  %v5899_v55 = vld [vmem:[#allocation2 + $0x398] sm:$0xff] }
  0xb9   :  { %v5907_v56 = vld [vmem:[#allocation2 + $0x3d8] sm:$0xff]  ;;  %v1319_v1 = vunpack.c.h.b16 %v270_v57 }
  0xba   :  { %1227 = vmatpush.bf16.msrb.mxu2 %v5868_v59  ;;  %1240 = vmatpush.bf16.msrb.mxu3 %v5876_v60  ;;  %v5881_v60 = vld [vmem:[#allocation2 + $0x308] sm:$0xff] }
  0xbc   :  { %1203 = vmatpush.bf16.msrb.mxu0 %v5850_v63  ;;  %1216 = vmatpush.bf16.msrb.mxu1 %v5858_v0  ;;  %v5906_v63 = vld [vmem:[#allocation2 + $0x3d0] sm:$0xff]  ;;  %v1318_v0 = vunpack.c.l.b16 %v270_v57  ;;  %v5913_v57 = vld [vmem:[#allocation2 + $0x408] sm:$0xff] }
  0xbd   :  { %909 = vmatmul.bf16.vlgmr.msra.gmra.mxu2 %v677_v5  ;;  %922 = vmatmul.bf16.vlgmr.msra.gmra.mxu3 %v678_v6  ;;  %v5888_v5 = vld [vmem:[#allocation2 + $0x340] sm:$0xff]  ;;  %v5919_v6 = vld [vmem:[#allocation2 + $0x438] sm:$0xff] }
  0xbe   :  { %1228 = vmatpush.bf16.msrb.mxu2 %v5867_v3  ;;  %1241 = vmatpush.bf16.msrb.mxu3 %v5875_v4  ;;  %v6325_v58 = vpop.f32.mrf.mxu2  ;;  %v6327_v59 = vpop.f32.mrf.mxu3  ;;  %v5880_v4 = vld [vmem:[#allocation2 + $0x300] sm:$0xff] }
  0xbf   :  { %v6329_v2 = vpop.f32.mrf.mxu0  ;;  %v6331_v3 = vpop.f32.mrf.mxu1 }
  0xc0   :  { %1204 = vmatpush.bf16.msrb.mxu0 %v5849_v8  ;;  %1217 = vmatpush.bf16.msrb.mxu1 %v5857_v9  ;;  %v5897_v8 = vld [vmem:[#allocation2 + $0x388] sm:$0xff] }
  0xc1   :  { %v5905_v9 = vld [vmem:[#allocation2 + $0x3c8] sm:$0xff] }
  0xc2   :  { %1229 = vmatpush.bf16.msrb.mxu2 %v5866_v10  ;;  %1242 = vmatpush.bf16.msrb.mxu3 %v5874_v11  ;;  %v1322_v10 = vpack.c.b16 %v1318_v0, %v1318_v0  ;;  %v1323_v11 = vpack.c.b16 %v1319_v1, %v1319_v1 }
  0xc4   :  { %1205 = vmatpush.bf16.msrb.mxu0 %v5848_v16  ;;  %1218 = vmatpush.bf16.msrb.mxu1 %v5856_v17  ;;  %v5926_v16 = vld [vmem:[#allocation2 + $0x470] sm:$0xff]  ;;  %v5896_v17 = vld [vmem:[#allocation2 + $0x380] sm:$0xff] }
  0xc6   :  { %1230 = vmatpush.bf16.msrb.mxu2 %v5865_v20  ;;  %1243 = vmatpush.bf16.msrb.mxu3 %v5873_v21  ;;  %v6333_v13 = vpop.f32.mrf.mxu2  ;;  %v6335_v14 = vpop.f32.mrf.mxu3  ;;  %v1321_v20 = vunpack.c.h.b16 %v271_v12  ;;  %v5935_v21 = vld [vmem:[#allocation2 + $0x4b8] sm:$0xff] }
  0xc7   :  { %1206 = vmatmul.bf16.vlgmr.msrb.gmra.mxu0 %v998_v23  ;;  %1219 = vmatmul.bf16.vlgmr.msrb.gmra.mxu1 %v999_v24  ;;  %v156_v23 = vpop.f32.mrf.mxu0  ;;  %v189_v24 = vpop.f32.mrf.mxu1 }
  0xc8   :  { %1522 = vmatpush.bf16.msra.mxu0 %v5887_v18  ;;  %1535 = vmatpush.bf16.msra.mxu1 %v5895_v19  ;;  %v5904_v18 = vld [vmem:[#allocation2 + $0x3c0] sm:$0xff]  ;;  %v1320_v19 = vunpack.c.l.b16 %v271_v12 }
  0xca   :  { %1231 = vmatpush.bf16.msrb.mxu2 %v5864_v29  ;;  %1244 = vmatpush.bf16.msrb.mxu3 %v5872_v30  ;;  %v1324_v28 = vpack.c.b16 %v1320_v19, %v1320_v19  ;;  %v1325_v29 = vpack.c.b16 %v1321_v20, %v1321_v20  ;;  %v5934_v30 = vld [vmem:[#allocation2 + $0x4b0] sm:$0xff] }
  0xcb   :  { %v5950_v19 = vld [vmem:[#allocation2 + $0x530] sm:$0xff] }
  0xcc   :  { %1523 = vmatpush.bf16.msra.mxu0 %v5886_v25  ;;  %1536 = vmatpush.bf16.msra.mxu1 %v5894_v26  ;;  %v6337_v25 = vpack.c.bf16 %v189_v24, %v156_v23  ;;  %v5917_v26 = vld [vmem:[#allocation2 + $0x428] sm:$0xff]  ;;  %v5958_v20 = vld [vmem:[#allocation2 + $0x570] sm:$0xff]  ;;  %v5975_v23 = vld [vmem:[#allocation2 + $0x5f8] sm:$0xff] }
  0xcd   :  { %1232 = vmatmul.bf16.vlgmr.msrb.gmra.mxu2 %v1000_v35  ;;  %1245 = vmatmul.bf16.vlgmr.msrb.gmra.mxu3 %v1001_v36  ;;  %v5916_v35 = vld [vmem:[#allocation2 + $0x420] sm:$0xff] }
  0xce   :  { %1548 = vmatpush.bf16.msra.mxu2 %v5903_v31  ;;  %1561 = vmatpush.bf16.msra.mxu3 %v5911_v32  ;;  %v5942_v31 = vld [vmem:[#allocation2 + $0x4f0] sm:$0xff]  ;;  %v222_v32 = vpop.f32.mrf.mxu2  ;;  %v5924_v36 = vld [vmem:[#allocation2 + $0x460] sm:$0xff] }
  0xcf   :  { %v6341_v39 = vpop.f32.mrf.mxu0  ;;  %v6343_v40 = vpop.f32.mrf.mxu1 }
  0xd0   :  { %1524 = vmatpush.bf16.msra.mxu0 %v5885_v33  ;;  %1537 = vmatpush.bf16.msra.mxu1 %v5893_v34  ;;  %v255_v33 = vpop.f32.mrf.mxu3 }
  0xd1   :  { %v6339_v34 = vpack.c.bf16 %v255_v33, %v222_v32  ;;  %v5948_v32 = vld [vmem:[#allocation2 + $0x520] sm:$0xff] }
  0xd2   :  { %1549 = vmatpush.bf16.msra.mxu2 %v5902_v37  ;;  %1562 = vmatpush.bf16.msra.mxu3 %v5910_v38  ;;  %v5933_v37 = vld [vmem:[#allocation2 + $0x4a8] sm:$0xff]  ;;  %v5956_v33 = vld [vmem:[#allocation2 + $0x560] sm:$0xff] }
  0xd3   :  { %v5941_v38 = vld [vmem:[#allocation2 + $0x4e8] sm:$0xff] }
  0xd4   :  { %1525 = vmatpush.bf16.msra.mxu0 %v5884_v41  ;;  %1538 = vmatpush.bf16.msra.mxu1 %v5892_v42  ;;  %v5915_v41 = vld [vmem:[#allocation2 + $0x418] sm:$0xff] }
  0xd5   :  { %v5923_v42 = vld [vmem:[#allocation2 + $0x458] sm:$0xff] }
  0xd6   :  { %1550 = vmatpush.bf16.msra.mxu2 %v5901_v43  ;;  %1563 = vmatpush.bf16.msra.mxu3 %v5909_v44  ;;  %v5932_v43 = vld [vmem:[#allocation2 + $0x4a0] sm:$0xff]  ;;  %v6345_v45 = vpop.f32.mrf.mxu2 }
  0xd7   :  { %v5940_v44 = vld [vmem:[#allocation2 + $0x4e0] sm:$0xff] }
  0xd8   :  { %1526 = vmatpush.bf16.msra.mxu0 %v5883_v47  ;;  %1539 = vmatpush.bf16.msra.mxu1 %v5891_v48  ;;  %v6347_v46 = vpop.f32.mrf.mxu3  ;;  %v5914_v47 = vld [vmem:[#allocation2 + $0x410] sm:$0xff] }
  0xd9   :  { %v5922_v48 = vld [vmem:[#allocation2 + $0x450] sm:$0xff] }
  0xda   :  { %1551 = vmatpush.bf16.msra.mxu2 %v5900_v49  ;;  %1564 = vmatpush.bf16.msra.mxu3 %v5908_v50  ;;  %v5931_v49 = vld [vmem:[#allocation2 + $0x498] sm:$0xff] }
  0xdb   :  { %v5939_v50 = vld [vmem:[#allocation2 + $0x4d8] sm:$0xff] }
  0xdc   :  { %1527 = vmatpush.bf16.msra.mxu0 %v5882_v53  ;;  %1540 = vmatpush.bf16.msra.mxu1 %v5890_v54  ;;  %v161_v53 = vpop.f32.mrf.mxu0  ;;  %v194_v54 = vpop.f32.mrf.mxu1 }
  0xde   :  { %1552 = vmatpush.bf16.msra.mxu2 %v5899_v55  ;;  %1565 = vmatpush.bf16.msra.mxu3 %v5907_v56  ;;  %v272_v55 = vpack.c.bf16 %v6323_v52, %v6321_v51  ;;  %v6351_v56 = vpack.c.bf16 %v194_v54, %v161_v53  ;;  %v273_v51 = vpack.c.bf16 %v6327_v59, %v6325_v58  ;;  %v5951_v52 = vld [vmem:[#allocation2 + $0x538] sm:$0xff]  ;;  %v5928_v58 = vld [vmem:[#allocation2 + $0x480] sm:$0xff]  ;;  %v5962_v54 = vld [vmem:[#allocation2 + $0x590] sm:$0xff] }
  0xdf   :  { %v5936_v59 = vld [vmem:[#allocation2 + $0x4c0] sm:$0xff]  ;;  %v274_v53 = vpack.c.bf16 %v6331_v3, %v6329_v2 }
  0xe0   :  { %1528 = vmatpush.bf16.msra.mxu0 %v5881_v60  ;;  %1541 = vmatpush.bf16.msra.mxu1 %v5889_v61  ;;  %v5921_v60 = vld [vmem:[#allocation2 + $0x448] sm:$0xff]  ;;  %v5930_v61 = vld [vmem:[#allocation2 + $0x490] sm:$0xff]  ;;  %v1642_v0 = vunpack.c.l.b16 %v272_v55  ;;  %v1643_v1 = vunpack.c.h.b16 %v272_v55 }
  0xe1   :  { %v5970_v55 = vld [vmem:[#allocation2 + $0x5d0] sm:$0xff] }
  0xe2   :  { %1553 = vmatpush.bf16.msra.mxu2 %v5898_v62  ;;  %1566 = vmatpush.bf16.msra.mxu3 %v5906_v63  ;;  %v5938_v62 = vld [vmem:[#allocation2 + $0x4d0] sm:$0xff]  ;;  %v227_v63 = vpop.f32.mrf.mxu2 }
  0xe4   :  { %1529 = vmatpush.bf16.msra.mxu0 %v5880_v4  ;;  %1542 = vmatpush.bf16.msra.mxu1 %v5888_v5  ;;  %v260_v4 = vpop.f32.mrf.mxu3  ;;  %v5912_v5 = vld [vmem:[#allocation2 + $0x400] sm:$0xff]  ;;  %v196_v12 = vpop.f32.mrf.mxu1 }
  0xe5   :  { %v6007_v12 = vld [vmem:[#allocation2 + $0x6f8] sm:$0xff] }
  0xe6   :  { %1554 = vmatpush.bf16.msra.mxu2 %v5897_v8  ;;  %1567 = vmatpush.bf16.msra.mxu3 %v5905_v9  ;;  %v5959_v8 = vld [vmem:[#allocation2 + $0x578] sm:$0xff]  ;;  %v5929_v9 = vld [vmem:[#allocation2 + $0x488] sm:$0xff] }
  0xe7   :  { %1530 = vmatmul.bf16.vlgmr.msra.gmra.mxu0 %v1322_v10  ;;  %1543 = vmatmul.bf16.vlgmr.msra.gmra.mxu1 %v1323_v11  ;;  %v5937_v10 = vld [vmem:[#allocation2 + $0x4c8] sm:$0xff]  ;;  %v163_v11 = vpop.f32.mrf.mxu0 }
  0xe8   :  { %1846 = vmatpush.bf16.msrb.mxu0 %v5919_v6  ;;  %1859 = vmatpush.bf16.msrb.mxu1 %v5927_v7  ;;  %v5920_v6 = vld [vmem:[#allocation2 + $0x440] sm:$0xff]  ;;  %v6353_v7 = vpack.c.bf16 %v260_v4, %v227_v63  ;;  %v5983_v63 = vld [vmem:[#allocation2 + $0x638] sm:$0xff]  ;;  %v5969_v4 = vld [vmem:[#allocation2 + $0x5c8] sm:$0xff] }
  0xe9   :  { %v5999_v11 = vld [vmem:[#allocation2 + $0x6b8] sm:$0xff] }
  0xea   :  { %1555 = vmatpush.bf16.msra.mxu2 %v5896_v17  ;;  %1568 = vmatpush.bf16.msra.mxu3 %v5904_v18  ;;  %v1644_v17 = vunpack.c.l.b16 %v273_v51  ;;  %v1645_v18 = vunpack.c.h.b16 %v273_v51  ;;  %v5990_v51 = vld [vmem:[#allocation2 + $0x670] sm:$0xff] }
  0xec   :  { %1847 = vmatpush.bf16.msrb.mxu0 %v5918_v15  ;;  %1860 = vmatpush.bf16.msrb.mxu1 %v5926_v16  ;;  %v1646_v15 = vpack.c.b16 %v1642_v0, %v1642_v0  ;;  %v1647_v16 = vpack.c.b16 %v1643_v1, %v1643_v1  ;;  %v262_v24 = vpop.f32.mrf.mxu3  ;;  %v5991_v0 = vld [vmem:[#allocation2 + $0x678] sm:$0xff]  ;;  %v5961_v1 = vld [vmem:[#allocation2 + $0x588] sm:$0xff] }
  0xed   :  { %1556 = vmatmul.bf16.vlgmr.msra.gmra.mxu2 %v1324_v28  ;;  %1569 = vmatmul.bf16.vlgmr.msra.gmra.mxu3 %v1325_v29  ;;  %v5949_v28 = vld [vmem:[#allocation2 + $0x528] sm:$0xff]  ;;  %v5979_v24 = vld [vmem:[#allocation2 + $0x618] sm:$0xff] }
  0xee   :  { %1872 = vmatpush.bf16.msrb.mxu2 %v5935_v21  ;;  %1885 = vmatpush.bf16.msrb.mxu3 %v5943_v22  ;;  %v229_v21 = vpop.f32.mrf.mxu2  ;;  %v5967_v22 = vld [vmem:[#allocation2 + $0x5b8] sm:$0xff]  ;;  %v5957_v29 = vld [vmem:[#allocation2 + $0x568] sm:$0xff] }
  0xef   :  { %v5988_v21 = vld [vmem:[#allocation2 + $0x660] sm:$0xff] }
  0xf0   :  { %1848 = vmatpush.bf16.msrb.mxu0 %v5917_v26  ;;  %1861 = vmatpush.bf16.msrb.mxu1 %v5925_v27  ;;  %v1648_v26 = vpack.c.b16 %v1644_v17, %v1644_v17  ;;  %v1649_v27 = vpack.c.b16 %v1645_v18, %v1645_v18 }
  0xf2   :  { %1873 = vmatpush.bf16.msrb.mxu2 %v5934_v30  ;;  %1886 = vmatpush.bf16.msrb.mxu3 %v5942_v31  ;;  %v5966_v30 = vld [vmem:[#allocation2 + $0x5b0] sm:$0xff] }
  0xf3   :  { %v5974_v31 = vld [vmem:[#allocation2 + $0x5f0] sm:$0xff] }
  0xf4   :  { %1849 = vmatpush.bf16.msrb.mxu0 %v5916_v35  ;;  %1862 = vmatpush.bf16.msrb.mxu1 %v5924_v36  ;;  %v5965_v35 = vld [vmem:[#allocation2 + $0x5a8] sm:$0xff] }
  0xf5   :  { %v5973_v36 = vld [vmem:[#allocation2 + $0x5e8] sm:$0xff] }
  0xf6   :  { %1874 = vmatpush.bf16.msrb.mxu2 %v5933_v37  ;;  %1887 = vmatpush.bf16.msrb.mxu3 %v5941_v38  ;;  %v5947_v37 = vld [vmem:[#allocation2 + $0x518] sm:$0xff] }
  0xf7   :  { %v5955_v38 = vld [vmem:[#allocation2 + $0x558] sm:$0xff] }
  0xf8   :  { %1850 = vmatpush.bf16.msrb.mxu0 %v5915_v41  ;;  %1863 = vmatpush.bf16.msrb.mxu1 %v5923_v42  ;;  %v5964_v41 = vld [vmem:[#allocation2 + $0x5a0] sm:$0xff] }
  0xf9   :  { %v5972_v42 = vld [vmem:[#allocation2 + $0x5e0] sm:$0xff] }
  0xfa   :  { %1875 = vmatpush.bf16.msrb.mxu2 %v5932_v43  ;;  %1888 = vmatpush.bf16.msrb.mxu3 %v5940_v44  ;;  %v5946_v43 = vld [vmem:[#allocation2 + $0x510] sm:$0xff] }
  0xfb   :  { %v5954_v44 = vld [vmem:[#allocation2 + $0x550] sm:$0xff] }
  0xfc   :  { %1851 = vmatpush.bf16.msrb.mxu0 %v5914_v47  ;;  %1864 = vmatpush.bf16.msrb.mxu1 %v5922_v48  ;;  %v5963_v47 = vld [vmem:[#allocation2 + $0x598] sm:$0xff] }
  0xfd   :  { %v5971_v48 = vld [vmem:[#allocation2 + $0x5d8] sm:$0xff] }
  0xfe   :  { %1876 = vmatpush.bf16.msrb.mxu2 %v5931_v49  ;;  %1889 = vmatpush.bf16.msrb.mxu3 %v5939_v50  ;;  %v5945_v49 = vld [vmem:[#allocation2 + $0x508] sm:$0xff] }
  0xff   :  { %v5953_v50 = vld [vmem:[#allocation2 + $0x548] sm:$0xff] }
 0x100   :  { %1852 = vmatpush.bf16.msrb.mxu0 %v5913_v57  ;;  %1865 = vmatpush.bf16.msrb.mxu1 %v5921_v60  ;;  %v5944_v57 = vld [vmem:[#allocation2 + $0x500] sm:$0xff] }
 0x101   :  { %v5952_v60 = vld [vmem:[#allocation2 + $0x540] sm:$0xff] }
 0x102   :  { %1877 = vmatpush.bf16.msrb.mxu2 %v5930_v61  ;;  %1890 = vmatpush.bf16.msrb.mxu3 %v5938_v62  ;;  %v1966_v61 = vunpack.c.l.b16 %v274_v53  ;;  %v1967_v62 = vunpack.c.h.b16 %v274_v53 }
 0x104   :  { %1853 = vmatpush.bf16.msrb.mxu0 %v5912_v5  ;;  %1866 = vmatpush.bf16.msrb.mxu1 %v5920_v6  ;;  %v275_v5 = vpack.c.bf16 %v6335_v14, %v6333_v13  ;;  %v1970_v2 = vpack.c.b16 %v1966_v61, %v1966_v61  ;;  %v1971_v3 = vpack.c.b16 %v1967_v62, %v1967_v62  ;;  %v5982_v6 = vld [vmem:[#allocation2 + $0x630] sm:$0xff]  ;;  %v5981_v13 = vld [vmem:[#allocation2 + $0x628] sm:$0xff] }
 0x105   :  { %v5989_v14 = vld [vmem:[#allocation2 + $0x668] sm:$0xff] }
 0x106   :  { %1878 = vmatpush.bf16.msrb.mxu2 %v5929_v9  ;;  %1891 = vmatpush.bf16.msrb.mxu3 %v5937_v10  ;;  %v1968_v9 = vunpack.c.l.b16 %v275_v5  ;;  %v1969_v10 = vunpack.c.h.b16 %v275_v5 }
 0x107   :  { %1854 = vmatmul.bf16.vlgmr.msrb.gmra.mxu0 %v1646_v15  ;;  %1867 = vmatmul.bf16.vlgmr.msrb.gmra.mxu1 %v1647_v16 }
 0x108   :  { %2170 = vmatpush.bf16.msra.mxu0 %v5951_v52  ;;  %2183 = vmatpush.bf16.msra.mxu1 %v5959_v8  ;;  %v5960_v52 = vld [vmem:[#allocation2 + $0x580] sm:$0xff]  ;;  %v1972_v17 = vpack.c.b16 %v1968_v9, %v1968_v9  ;;  %v1973_v18 = vpack.c.b16 %v1969_v10, %v1969_v10  ;;  %v2292_v9 = vunpack.c.l.b16 %v6339_v34  ;;  %v2293_v10 = vunpack.c.h.b16 %v6339_v34 }
 0x109   :  { %v5968_v8 = vld [vmem:[#allocation2 + $0x5c0] sm:$0xff] }
 0x10a   :  { %1879 = vmatpush.bf16.msrb.mxu2 %v5928_v58  ;;  %1892 = vmatpush.bf16.msrb.mxu3 %v5936_v59  ;;  %v6006_v58 = vld [vmem:[#allocation2 + $0x6f0] sm:$0xff]  ;;  %v5980_v59 = vld [vmem:[#allocation2 + $0x620] sm:$0xff] }
 0x10c   :  { %2171 = vmatpush.bf16.msra.mxu0 %v5950_v19  ;;  %2184 = vmatpush.bf16.msra.mxu1 %v5958_v20  ;;  %v5998_v20 = vld [vmem:[#allocation2 + $0x6b0] sm:$0xff] }
 0x10d   :  { %1880 = vmatmul.bf16.vlgmr.msrb.gmra.mxu2 %v1648_v26  ;;  %1893 = vmatmul.bf16.vlgmr.msrb.gmra.mxu3 %v1649_v27  ;;  %v5987_v26 = vld [vmem:[#allocation2 + $0x658] sm:$0xff] }
 0x10e   :  { %2196 = vmatpush.bf16.msra.mxu2 %v5967_v22  ;;  %2209 = vmatpush.bf16.msra.mxu3 %v5975_v23  ;;  %v5997_v22 = vld [vmem:[#allocation2 + $0x6a8] sm:$0xff] }
 0x10f   :  { %v6005_v23 = vld [vmem:[#allocation2 + $0x6e8] sm:$0xff] }
 0x110   :  { %2172 = vmatpush.bf16.msra.mxu0 %v5949_v28  ;;  %2185 = vmatpush.bf16.msra.mxu1 %v5957_v29  ;;  %v5996_v29 = vld [vmem:[#allocation2 + $0x6a0] sm:$0xff] }
 0x112   :  { %2197 = vmatpush.bf16.msra.mxu2 %v5966_v30  ;;  %2210 = vmatpush.bf16.msra.mxu3 %v5974_v31  ;;  %v6004_v30 = vld [vmem:[#allocation2 + $0x6e0] sm:$0xff]  ;;  %v5978_v31 = vld [vmem:[#allocation2 + $0x610] sm:$0xff] }
 0x114   :  { %2173 = vmatpush.bf16.msra.mxu0 %v5948_v32  ;;  %2186 = vmatpush.bf16.msra.mxu1 %v5956_v33  ;;  %v5986_v32 = vld [vmem:[#allocation2 + $0x650] sm:$0xff] }
 0x116   :  { %2198 = vmatpush.bf16.msra.mxu2 %v5965_v35  ;;  %2211 = vmatpush.bf16.msra.mxu3 %v5973_v36  ;;  %v5995_v36 = vld [vmem:[#allocation2 + $0x698] sm:$0xff] }
 0x118   :  { %2174 = vmatpush.bf16.msra.mxu0 %v5947_v37  ;;  %2187 = vmatpush.bf16.msra.mxu1 %v5955_v38  ;;  %v6003_v37 = vld [vmem:[#allocation2 + $0x6d8] sm:$0xff] }
 0x11a   :  { %2199 = vmatpush.bf16.msra.mxu2 %v5964_v41  ;;  %2212 = vmatpush.bf16.msra.mxu3 %v5972_v42  ;;  %v5977_v42 = vld [vmem:[#allocation2 + $0x608] sm:$0xff] }
 0x11c   :  { %2175 = vmatpush.bf16.msra.mxu0 %v5946_v43  ;;  %2188 = vmatpush.bf16.msra.mxu1 %v5954_v44  ;;  %v5985_v43 = vld [vmem:[#allocation2 + $0x648] sm:$0xff] }
 0x11e   :  { %2200 = vmatpush.bf16.msra.mxu2 %v5963_v47  ;;  %2213 = vmatpush.bf16.msra.mxu3 %v5971_v48  ;;  %v5994_v48 = vld [vmem:[#allocation2 + $0x690] sm:$0xff] }
 0x120   :  { %2176 = vmatpush.bf16.msra.mxu0 %v5945_v49  ;;  %2189 = vmatpush.bf16.msra.mxu1 %v5953_v50  ;;  %v6002_v49 = vld [vmem:[#allocation2 + $0x6d0] sm:$0xff] }
 0x122   :  { %2201 = vmatpush.bf16.msra.mxu2 %v5962_v54  ;;  %2214 = vmatpush.bf16.msra.mxu3 %v5970_v55  ;;  %v5976_v54 = vld [vmem:[#allocation2 + $0x600] sm:$0xff] }
 0x123   :  { %v626_v15 = vpop.f32.mrf.mxu0  ;;  %v639_v16 = vpop.f32.mrf.mxu1  ;;  %v5984_v55 = vld [vmem:[#allocation2 + $0x640] sm:$0xff] }
 0x124   :  { %2177 = vmatpush.bf16.msra.mxu0 %v5944_v57  ;;  %2190 = vmatpush.bf16.msra.mxu1 %v5952_v60  ;;  %v640_v19 = vadd.f32 %v639_v16, %v626_v15  ;;  %v2290_v57 = vunpack.c.l.b16 %v6337_v25  ;;  %v2291_v60 = vunpack.c.h.b16 %v6337_v25  ;;  %v5992_v25 = vld [vmem:[#allocation2 + $0x680] sm:$0xff]  ;;  %v6013_v16 = vld [vmem:[#allocation2 + $0x728] sm:$0xff] }
 0x126   :  { %2202 = vmatpush.bf16.msra.mxu2 %v5961_v1  ;;  %2215 = vmatpush.bf16.msra.mxu3 %v5969_v4  ;;  %v5993_v1 = vld [vmem:[#allocation2 + $0x688] sm:$0xff]  ;;  %v2294_v5 = vpack.c.b16 %v2290_v57, %v2290_v57  ;;  %v6008_v57 = vld [vmem:[#allocation2 + $0x700] sm:$0xff] }
 0x127   :  { %2178 = vmatmul.bf16.vlgmr.msra.gmra.mxu0 %v1970_v2  ;;  %2191 = vmatmul.bf16.vlgmr.msra.gmra.mxu1 %v1971_v3  ;;  %v6001_v4 = vld [vmem:[#allocation2 + $0x6c8] sm:$0xff]  ;;  %v2295_v2 = vpack.c.b16 %v2291_v60, %v2291_v60  ;;  %v6016_v60 = vld [vmem:[#allocation2 + $0x740] sm:$0xff] }
 0x128   :  { %2494 = vmatpush.bf16.msrb.mxu0 %v5983_v63  ;;  %2507 = vmatpush.bf16.msrb.mxu1 %v5991_v0  ;;  %v6015_v63 = vld [vmem:[#allocation2 + $0x738] sm:$0xff] }
 0x129   :  { %v6023_v0 = vld [vmem:[#allocation2 + $0x778] sm:$0xff] }
 0x12a   :  { %2203 = vmatpush.bf16.msra.mxu2 %v5960_v52  ;;  %2216 = vmatpush.bf16.msra.mxu3 %v5968_v8  ;;  %v6022_v52 = vld [vmem:[#allocation2 + $0x770] sm:$0xff]  ;;  %v6000_v8 = vld [vmem:[#allocation2 + $0x6c0] sm:$0xff] }
 0x12b   :  { %v628_v27 = vpop.f32.mrf.mxu0  ;;  %v641_v28 = vpop.f32.mrf.mxu1 }
 0x12c   :  { %2495 = vmatpush.bf16.msrb.mxu0 %v5982_v6  ;;  %2508 = vmatpush.bf16.msrb.mxu1 %v5990_v51  ;;  %v6014_v51 = vld [vmem:[#allocation2 + $0x730] sm:$0xff]  ;;  %v6037_v27 = vld [vmem:[#allocation2 + $0x7e8] sm:$0xff] }
 0x12d   :  { %2204 = vmatmul.bf16.vlgmr.msra.gmra.mxu2 %v1972_v17  ;;  %2217 = vmatmul.bf16.vlgmr.msra.gmra.mxu3 %v1973_v18  ;;  %v6021_v17 = vld [vmem:[#allocation2 + $0x768] sm:$0xff]  ;;  %v2296_v18 = vpack.c.b16 %v2292_v9, %v2292_v9 }
 0x12e   :  { %2520 = vmatpush.bf16.msrb.mxu2 %v5999_v11  ;;  %2533 = vmatpush.bf16.msrb.mxu3 %v6007_v12  ;;  %v6031_v11 = vld [vmem:[#allocation2 + $0x7b8] sm:$0xff] }
 0x12f   :  { %v6039_v12 = vld [vmem:[#allocation2 + $0x7f8] sm:$0xff] }
 0x130   :  { %2496 = vmatpush.bf16.msrb.mxu0 %v5981_v13  ;;  %2509 = vmatpush.bf16.msrb.mxu1 %v5989_v14  ;;  %v652_v33 = vpop.f32.mrf.mxu2  ;;  %v665_v35 = vpop.f32.mrf.mxu3 }
 0x131   :  { %v653_v38 = vadd.f32 %v652_v33, %v640_v19  ;;  %v2297_v19 = vpack.c.b16 %v2293_v10, %v2293_v10  ;;  %v6036_v33 = vld [vmem:[#allocation2 + $0x7e0] sm:$0xff] }
 0x132   :  { %2521 = vmatpush.bf16.msrb.mxu2 %v5998_v20  ;;  %2534 = vmatpush.bf16.msrb.mxu3 %v6006_v58  ;;  %v6030_v20 = vld [vmem:[#allocation2 + $0x7b0] sm:$0xff] }
 0x133   :  { %v666_v41 = vadd.f32 %v665_v35, %v653_v38  ;;  %v6038_v58 = vld [vmem:[#allocation2 + $0x7f0] sm:$0xff] }
 0x134   :  { %2497 = vmatpush.bf16.msrb.mxu0 %v5980_v59  ;;  %2510 = vmatpush.bf16.msrb.mxu1 %v5988_v21  ;;  %v884_v44 = vpop.f32.mrf.mxu0  ;;  %v897_v47 = vpop.f32.mrf.mxu1  ;;  %v6018_v38 = vld [vmem:[#allocation2 + $0x750] sm:$0xff] }
 0x135   :  { %v885_v50 = vadd.f32 %v884_v44, %v666_v41  ;;  %v6027_v41 = vld [vmem:[#allocation2 + $0x798] sm:$0xff]  ;;  %v6009_v44 = vld [vmem:[#allocation2 + $0x708] sm:$0xff] }
 0x136   :  { %2522 = vmatpush.bf16.msrb.mxu2 %v5997_v22  ;;  %2535 = vmatpush.bf16.msrb.mxu3 %v6005_v23  ;;  %v6012_v22 = vld [vmem:[#allocation2 + $0x720] sm:$0xff] }
 0x137   :  { %v898_v53 = vadd.f32 %v897_v47, %v885_v50  ;;  %v6020_v23 = vld [vmem:[#allocation2 + $0x760] sm:$0xff]  ;;  %v6017_v47 = vld [vmem:[#allocation2 + $0x748] sm:$0xff] }
 0x138   :  { %2498 = vmatpush.bf16.msrb.mxu0 %v5979_v24  ;;  %2511 = vmatpush.bf16.msrb.mxu1 %v5987_v26  ;;  %v654_v61 = vpop.f32.mrf.mxu2  ;;  %v667_v62 = vpop.f32.mrf.mxu3  ;;  %v6029_v26 = vld [vmem:[#allocation2 + $0x7a8] sm:$0xff] }
 0x13a   :  { %2523 = vmatpush.bf16.msrb.mxu2 %v5996_v29  ;;  %2536 = vmatpush.bf16.msrb.mxu3 %v6004_v30  ;;  %v6011_v30 = vld [vmem:[#allocation2 + $0x718] sm:$0xff] }
 0x13c   :  { %2499 = vmatpush.bf16.msrb.mxu0 %v5978_v31  ;;  %2512 = vmatpush.bf16.msrb.mxu1 %v5986_v32  ;;  %v886_v3 = vpop.f32.mrf.mxu0  ;;  %v899_v6 = vpop.f32.mrf.mxu1  ;;  %v6019_v31 = vld [vmem:[#allocation2 + $0x758] sm:$0xff]  ;;  %v6028_v32 = vld [vmem:[#allocation2 + $0x7a0] sm:$0xff] }
 0x13e   :  { %2524 = vmatpush.bf16.msrb.mxu2 %v5995_v36  ;;  %2537 = vmatpush.bf16.msrb.mxu3 %v6003_v37  ;;  %v6010_v37 = vld [vmem:[#allocation2 + $0x710] sm:$0xff] }
 0x140   :  { %2500 = vmatpush.bf16.msrb.mxu0 %v5977_v42  ;;  %2513 = vmatpush.bf16.msrb.mxu1 %v5985_v43  ;;  %v910_v13 = vpop.f32.mrf.mxu2  ;;  %v923_v14 = vpop.f32.mrf.mxu3  ;;  %v6035_v42 = vld [vmem:[#allocation2 + $0x7d8] sm:$0xff] }
 0x141   :  { %v911_v15 = vadd.f32 %v910_v13, %v898_v53  ;;  %v6026_v53 = vld [vmem:[#allocation2 + $0x790] sm:$0xff] }
 0x142   :  { %2525 = vmatpush.bf16.msrb.mxu2 %v5994_v48  ;;  %2538 = vmatpush.bf16.msrb.mxu3 %v6002_v49  ;;  %v278_v49 = vpack.c.bf16 %v6343_v40, %v6341_v39  ;;  %v6033_v39 = vld [vmem:[#allocation2 + $0x7c8] sm:$0xff]  ;;  %v279_v40 = vpack.c.bf16 %v6347_v46, %v6345_v45  ;;  %v6071_v45 = vld [vmem:[#allocation2 + $0x8f8] sm:$0xff] }
 0x143   :  { %v924_v34 = vadd.f32 %v923_v14, %v911_v15  ;;  %v6045_v46 = vld [vmem:[#allocation2 + $0x828] sm:$0xff]  ;;  %v6062_v15 = vld [vmem:[#allocation2 + $0x8b0] sm:$0xff] }
 0x144   :  { %2501 = vmatpush.bf16.msrb.mxu0 %v5976_v54  ;;  %2514 = vmatpush.bf16.msrb.mxu1 %v5984_v55  ;;  %v1207_v59 = vpop.f32.mrf.mxu0  ;;  %v1220_v21 = vpop.f32.mrf.mxu1  ;;  %v6034_v54 = vld [vmem:[#allocation2 + $0x7d0] sm:$0xff]  ;;  %v2614_v61 = vunpack.c.l.b16 %v278_v49  ;;  %v2615_v62 = vunpack.c.h.b16 %v278_v49  ;;  %v2616_v9 = vunpack.c.l.b16 %v279_v40  ;;  %v2617_v10 = vunpack.c.h.b16 %v279_v40 }
 0x145   :  { %v1221_v24 = vadd.f32 %v1220_v21, %v1207_v59  ;;  %v6069_v59 = vld [vmem:[#allocation2 + $0x8e8] sm:$0xff]  ;;  %v6043_v21 = vld [vmem:[#allocation2 + $0x818] sm:$0xff]  ;;  %v2939_v49 = vunpack.c.h.b16 %v6351_v56 }
 0x146   :  { %2526 = vmatpush.bf16.msrb.mxu2 %v5993_v1  ;;  %2539 = vmatpush.bf16.msrb.mxu3 %v6001_v4  ;;  %v6055_v1 = vld [vmem:[#allocation2 + $0x878] sm:$0xff]  ;;  %v6025_v4 = vld [vmem:[#allocation2 + $0x788] sm:$0xff]  ;;  %v2618_v3 = vpack.c.b16 %v2614_v61, %v2614_v61  ;;  %v2619_v6 = vpack.c.b16 %v2615_v62, %v2615_v62  ;;  %v2620_v13 = vpack.c.b16 %v2616_v9, %v2616_v9  ;;  %v6056_v61 = vld [vmem:[#allocation2 + $0x880] sm:$0xff] }
 0x147   :  { %2502 = vmatmul.bf16.vlgmr.msrb.gmra.mxu0 %v2294_v5  ;;  %2515 = vmatmul.bf16.vlgmr.msrb.gmra.mxu1 %v2295_v2  ;;  %v2621_v14 = vpack.c.b16 %v2617_v10, %v2617_v10  ;;  %v6064_v62 = vld [vmem:[#allocation2 + $0x8c0] sm:$0xff] }
 0x148   :  { %2818 = vmatpush.bf16.msra.mxu0 %v6015_v63  ;;  %2831 = vmatpush.bf16.msra.mxu1 %v6023_v0  ;;  %v912_v28 = vpop.f32.mrf.mxu2  ;;  %v925_v29 = vpop.f32.mrf.mxu3  ;;  %v6047_v0 = vld [vmem:[#allocation2 + $0x838] sm:$0xff] }
 0x149   :  { %v6042_v28 = vld [vmem:[#allocation2 + $0x810] sm:$0xff] }
 0x14a   :  { %2527 = vmatpush.bf16.msrb.mxu2 %v5992_v25  ;;  %2540 = vmatpush.bf16.msrb.mxu3 %v6000_v8  ;;  %v6024_v25 = vld [vmem:[#allocation2 + $0x780] sm:$0xff]  ;;  %v6050_v29 = vld [vmem:[#allocation2 + $0x850] sm:$0xff] }
 0x14b   :  { %v6032_v8 = vld [vmem:[#allocation2 + $0x7c0] sm:$0xff] }
 0x14c   :  { %2819 = vmatpush.bf16.msra.mxu0 %v6014_v51  ;;  %2832 = vmatpush.bf16.msra.mxu1 %v6022_v52  ;;  %v1209_v35 = vpop.f32.mrf.mxu0  ;;  %v1222_v36 = vpop.f32.mrf.mxu1  ;;  %v6046_v51 = vld [vmem:[#allocation2 + $0x830] sm:$0xff] }
 0x14d   :  { %2528 = vmatmul.bf16.vlgmr.msrb.gmra.mxu2 %v2296_v18  ;;  %2541 = vmatmul.bf16.vlgmr.msrb.gmra.mxu3 %v2297_v19  ;;  %v6054_v52 = vld [vmem:[#allocation2 + $0x870] sm:$0xff]  ;;  %v6041_v36 = vld [vmem:[#allocation2 + $0x808] sm:$0xff] }
 0x14e   :  { %2844 = vmatpush.bf16.msra.mxu2 %v6031_v11  ;;  %2857 = vmatpush.bf16.msra.mxu3 %v6039_v12  ;;  %v6063_v11 = vld [vmem:[#allocation2 + $0x8b8] sm:$0xff]  ;;  %v6053_v12 = vld [vmem:[#allocation2 + $0x868] sm:$0xff] }
 0x150   :  { %2820 = vmatpush.bf16.msra.mxu0 %v6013_v16  ;;  %2833 = vmatpush.bf16.msra.mxu1 %v6021_v17  ;;  %v1233_v43 = vpop.f32.mrf.mxu2  ;;  %v1246_v48 = vpop.f32.mrf.mxu3  ;;  %v6070_v16 = vld [vmem:[#allocation2 + $0x8f0] sm:$0xff] }
 0x151   :  { %v1234_v50 = vadd.f32 %v1233_v43, %v1221_v24  ;;  %v6068_v24 = vld [vmem:[#allocation2 + $0x8e0] sm:$0xff] }
 0x152   :  { %2845 = vmatpush.bf16.msra.mxu2 %v6030_v20  ;;  %2858 = vmatpush.bf16.msra.mxu3 %v6038_v58  ;;  %v6044_v20 = vld [vmem:[#allocation2 + $0x820] sm:$0xff] }
 0x153   :  { %v1247_v55 = vadd.f32 %v1246_v48, %v1234_v50  ;;  %v6052_v58 = vld [vmem:[#allocation2 + $0x860] sm:$0xff]  ;;  %v2938_v48 = vunpack.c.l.b16 %v6351_v56  ;;  %v6057_v50 = vld [vmem:[#allocation2 + $0x888] sm:$0xff] }
 0x154   :  { %2821 = vmatpush.bf16.msra.mxu0 %v6012_v22  ;;  %2834 = vmatpush.bf16.msra.mxu1 %v6020_v23  ;;  %v6051_v22 = vld [vmem:[#allocation2 + $0x858] sm:$0xff]  ;;  %v6060_v23 = vld [vmem:[#allocation2 + $0x8a0] sm:$0xff] }
 0x155   :  { %v6367_v63 = vadd.f32 %v1247_v55, %v924_v34  ;;  %v6061_v34 = vld [vmem:[#allocation2 + $0x8a8] sm:$0xff] }
 0x156   :  { %2846 = vmatpush.bf16.msra.mxu2 %v6029_v26  ;;  %2859 = vmatpush.bf16.msra.mxu3 %v6037_v27 }
 0x158   :  { %2822 = vmatpush.bf16.msra.mxu0 %v6011_v30  ;;  %2835 = vmatpush.bf16.msra.mxu1 %v6019_v31  ;;  %v1235_v5 = vpop.f32.mrf.mxu2  ;;  %v1248_v2 = vpop.f32.mrf.mxu3  ;;  %v6059_v30 = vld [vmem:[#allocation2 + $0x898] sm:$0xff] }
 0x159   :  { %v6067_v31 = vld [vmem:[#allocation2 + $0x8d8] sm:$0xff] }
 0x15a   :  { %2847 = vmatpush.bf16.msra.mxu2 %v6028_v32  ;;  %2860 = vmatpush.bf16.msra.mxu3 %v6036_v33 }
 0x15c   :  { %2823 = vmatpush.bf16.msra.mxu0 %v6010_v37  ;;  %2836 = vmatpush.bf16.msra.mxu1 %v6018_v38  ;;  %v6049_v37 = vld [vmem:[#allocation2 + $0x848] sm:$0xff] }
 0x15e   :  { %2848 = vmatpush.bf16.msra.mxu2 %v6027_v41  ;;  %2861 = vmatpush.bf16.msra.mxu3 %v6035_v42  ;;  %v6058_v41 = vld [vmem:[#allocation2 + $0x890] sm:$0xff] }
 0x15f   :  { %v6066_v42 = vld [vmem:[#allocation2 + $0x8d0] sm:$0xff] }
 0x160   :  { %2824 = vmatpush.bf16.msra.mxu0 %v6009_v44  ;;  %2837 = vmatpush.bf16.msra.mxu1 %v6017_v47  ;;  %v6040_v44 = vld [vmem:[#allocation2 + $0x800] sm:$0xff] }
 0x161   :  { %v6048_v47 = vld [vmem:[#allocation2 + $0x840] sm:$0xff] }
 0x162   :  { %2849 = vmatpush.bf16.msra.mxu2 %v6026_v53  ;;  %2862 = vmatpush.bf16.msra.mxu3 %v6034_v54  ;;  %v6065_v53 = vld [vmem:[#allocation2 + $0x8c8] sm:$0xff] }
 0x164   :  { %2825 = vmatpush.bf16.msra.mxu0 %v6008_v57  ;;  %2838 = vmatpush.bf16.msra.mxu1 %v6016_v60  ;;  %v1531_v17 = vpop.f32.mrf.mxu0  ;;  %v1544_v18 = vpop.f32.mrf.mxu1  ;;  %v2942_v57 = vpack.c.b16 %v2938_v48, %v2938_v48  ;;  %v2943_v60 = vpack.c.b16 %v2939_v49, %v2939_v49 }
 0x165   :  { %v1545_v19 = vadd.f32 %v1544_v18, %v1531_v17 }
 0x166   :  { %2850 = vmatpush.bf16.msra.mxu2 %v6025_v4  ;;  %2863 = vmatpush.bf16.msra.mxu3 %v6033_v39 }
 0x167   :  { %2826 = vmatmul.bf16.vlgmr.msra.gmra.mxu0 %v2618_v3  ;;  %2839 = vmatmul.bf16.vlgmr.msra.gmra.mxu1 %v2619_v6 }
 0x168   :  { %3142 = vmatpush.bf16.msrb.mxu0 %v6047_v0  ;;  %3155 = vmatpush.bf16.msrb.mxu1 %v6055_v1  ;;  %v2941_v0 = vunpack.c.h.b16 %v6353_v7 }
 0x16a   :  { %2851 = vmatpush.bf16.msra.mxu2 %v6024_v25  ;;  %2864 = vmatpush.bf16.msra.mxu3 %v6032_v8  ;;  %v2945_v1 = vpack.c.b16 %v2941_v0, %v2941_v0 }
 0x16c   :  { %3143 = vmatpush.bf16.msrb.mxu0 %v6046_v51  ;;  %3156 = vmatpush.bf16.msrb.mxu1 %v6054_v52  ;;  %v1533_v26 = vpop.f32.mrf.mxu0  ;;  %v1546_v27 = vpop.f32.mrf.mxu1 }
 0x16d   :  { %2852 = vmatmul.bf16.vlgmr.msra.gmra.mxu2 %v2620_v13  ;;  %2865 = vmatmul.bf16.vlgmr.msra.gmra.mxu3 %v2621_v14 }
 0x16e   :  { %3168 = vmatpush.bf16.msrb.mxu2 %v6063_v11  ;;  %3181 = vmatpush.bf16.msrb.mxu3 %v6071_v45 }
 0x170   :  { %3144 = vmatpush.bf16.msrb.mxu0 %v6045_v46  ;;  %3157 = vmatpush.bf16.msrb.mxu1 %v6053_v12  ;;  %v1557_v32 = vpop.f32.mrf.mxu2  ;;  %v1570_v33 = vpop.f32.mrf.mxu3 }
 0x171   :  { %v1558_v35 = vadd.f32 %v1557_v32, %v1545_v19 }
 0x172   :  { %3169 = vmatpush.bf16.msrb.mxu2 %v6062_v15  ;;  %3182 = vmatpush.bf16.msrb.mxu3 %v6070_v16 }
 0x173   :  { %v1571_v38 = vadd.f32 %v1570_v33, %v1558_v35 }
 0x174   :  { %3145 = vmatpush.bf16.msrb.mxu0 %v6044_v20  ;;  %3158 = vmatpush.bf16.msrb.mxu1 %v6052_v58 }
 0x175   :  { %v1574_v43 = vadd.f32 %v1571_v38, %v6367_v63  ;;  %v2940_v63 = vunpack.c.l.b16 %v6353_v7 }
 0x176   :  { %3170 = vmatpush.bf16.msrb.mxu2 %v6061_v34  ;;  %3183 = vmatpush.bf16.msrb.mxu3 %v6069_v59 }
 0x177   :  { %v2944_v56 = vpack.c.b16 %v2940_v63, %v2940_v63 }
 0x178   :  { %3146 = vmatpush.bf16.msrb.mxu0 %v6043_v21  ;;  %3159 = vmatpush.bf16.msrb.mxu1 %v6051_v22  ;;  %v1559_v54 = vpop.f32.mrf.mxu2  ;;  %v1572_v55 = vpop.f32.mrf.mxu3 }
 0x17a   :  { %3171 = vmatpush.bf16.msrb.mxu2 %v6060_v23  ;;  %3184 = vmatpush.bf16.msrb.mxu3 %v6068_v24 }
 0x17c   :  { %3147 = vmatpush.bf16.msrb.mxu0 %v6042_v28  ;;  %3160 = vmatpush.bf16.msrb.mxu1 %v6050_v29 }
 0x17e   :  { %3172 = vmatpush.bf16.msrb.mxu2 %v6059_v30  ;;  %3185 = vmatpush.bf16.msrb.mxu3 %v6067_v31 }
 0x180   :  { %3148 = vmatpush.bf16.msrb.mxu0 %v6041_v36  ;;  %3161 = vmatpush.bf16.msrb.mxu1 %v6049_v37 }
 0x182   :  { %3173 = vmatpush.bf16.msrb.mxu2 %v6058_v41  ;;  %3186 = vmatpush.bf16.msrb.mxu3 %v6066_v42 }
 0x184   :  { %3149 = vmatpush.bf16.msrb.mxu0 %v6040_v44  ;;  %3162 = vmatpush.bf16.msrb.mxu1 %v6048_v47  ;;  %v1855_v4 = vpop.f32.mrf.mxu0  ;;  %v1868_v39 = vpop.f32.mrf.mxu1 }
 0x185   :  { %v1869_v40 = vadd.f32 %v1868_v39, %v1855_v4  ;;  %v6226_v4 = vmov 0  }
 0x186   :  { %3174 = vmatpush.bf16.msrb.mxu2 %v6057_v50  ;;  %3187 = vmatpush.bf16.msrb.mxu3 %v6065_v53 }
 0x187   :  { %3150 = vmatmul.bf16.vlgmr.msrb.gmra.mxu0 %v2942_v57  ;;  %3163 = vmatmul.bf16.vlgmr.msrb.gmra.mxu1 %v2943_v60 }
 0x188   :  { %6160 = vset.pattern.permute.xlu1 %v6226_v4  ;;  %6161 = vset.pattern.permute.xlu2 %v6226_v4 }
 0x189   :  { %6162 = vset.pattern.permute.xlu0 %v6226_v4 }
 0x18a   :  { %3175 = vmatpush.bf16.msrb.mxu2 %v6056_v61  ;;  %3188 = vmatpush.bf16.msrb.mxu3 %v6064_v62 }
 0x18c   :  { %v1857_v5 = vpop.f32.mrf.mxu0  ;;  %v1870_v2 = vpop.f32.mrf.mxu1 }
 0x18d   :  { %3176 = vmatmul.bf16.vlgmr.msrb.gmra.mxu2 %v2944_v56  ;;  %3189 = vmatmul.bf16.vlgmr.msrb.gmra.mxu3 %v2945_v1 }
 0x190   :  { %v1881_v3 = vpop.f32.mrf.mxu2  ;;  %v1894_v6 = vpop.f32.mrf.mxu3 }
 0x191   :  { %v1882_v51 = vadd.f32 %v1881_v3, %v1869_v40 }
 0x193   :  { %v1895_v52 = vadd.f32 %v1894_v6, %v1882_v51 }
 0x195   :  { %v1898_v25 = vadd.f32 %v1895_v52, %v1574_v43 }
 0x198   :  { %v1883_v8 = vpop.f32.mrf.mxu2  ;;  %v1896_v7 = vpop.f32.mrf.mxu3 }
 0x199   :  { %v3214_v8 = vld [vmem:[%s6445_s3] sm:$0xff] }
 0x1a4   :  { %v2179_v9 = vpop.f32.mrf.mxu0  ;;  %v2192_v10 = vpop.f32.mrf.mxu1 }
 0x1a5   :  { %v2193_v11 = vadd.f32 %v2192_v10, %v2179_v9  ;;  %v3222_v10 = vld [vmem:[%s6446_s4] sm:$0xff] }
 0x1ac   :  { %v2181_v45 = vpop.f32.mrf.mxu0  ;;  %v2194_v46 = vpop.f32.mrf.mxu1 }
 0x1b0   :  { %v2205_v12 = vpop.f32.mrf.mxu2  ;;  %v2218_v13 = vpop.f32.mrf.mxu3 }
 0x1b1   :  { %v2206_v14 = vadd.f32 %v2205_v12, %v2193_v11 }
 0x1b3   :  { %v2219_v15 = vadd.f32 %v2218_v13, %v2206_v14 }
 0x1b5   :  { %v2222_v16 = vadd.f32 %v2219_v15, %v1898_v25 }
 0x1b8   :  { %v2207_v17 = vpop.f32.mrf.mxu2  ;;  %v2220_v18 = vpop.f32.mrf.mxu3 }
 0x1b9   :  { %v6073_v17 = vld [vmem:[%s6447_s5 + $0x8] sm:$0xff]  ;;  %v6074_v18 = vld [vmem:[%s6447_s5 + $0x10] sm:$0xff] }
 0x1c4   :  { %v2503_v19 = vpop.f32.mrf.mxu0  ;;  %v2516_v20 = vpop.f32.mrf.mxu1 }
 0x1c5   :  { %v2517_v58 = vadd.f32 %v2516_v20, %v2503_v19  ;;  %v6079_v19 = vld [vmem:[%s6447_s5 + $0x38] sm:$0xff] }
 0x1c6   :  { %v6075_v20 = vld [vmem:[%s6447_s5 + $0x18] sm:$0xff] }
 0x1cc   :  { %v2505_v34 = vpop.f32.mrf.mxu0  ;;  %v2518_v59 = vpop.f32.mrf.mxu1 }
 0x1cd   :  { %v6076_v34 = vld [vmem:[%s6447_s5 + $0x20] sm:$0xff] }
 0x1ce   :  { %v6088_v59 = vld [vmem:[#allocation4 + $0x38] sm:$0xff] }
 0x1cf   :  { %3553 = vmatpush.bf16.msra.mxu2 %v6088_v59  ;;  %v6123_v59 = vld [vmem:[#allocation4 + $0x150] sm:$0xff] }
 0x1d0   :  { %v2529_v21 = vpop.f32.mrf.mxu2  ;;  %v2542_v22 = vpop.f32.mrf.mxu3 }
 0x1d1   :  { %v2530_v23 = vadd.f32 %v2529_v21, %v2517_v58  ;;  %v6080_v58 = vld [vmem:[%s6447_s5 + $0x40] sm:$0xff]  ;;  %v6087_v21 = vld [vmem:[#allocation4 + $0x30] sm:$0xff] }
 0x1d3   :  { %v2543_v24 = vadd.f32 %v2542_v22, %v2530_v23  ;;  %3554 = vmatpush.bf16.msra.mxu2 %v6087_v21  ;;  %v6086_v22 = vld [vmem:[#allocation4 + $0x28] sm:$0xff]  ;;  %v6085_v23 = vld [vmem:[#allocation4 + $0x20] sm:$0xff] }
 0x1d5   :  { %v2546_v26 = vadd.f32 %v2543_v24, %v2222_v16  ;;  %v6072_v16 = vld [vmem:[%s6447_s5] sm:$0xff]  ;;  %v6077_v24 = vld [vmem:[%s6447_s5 + $0x28] sm:$0xff] }
 0x1d7   :  { %3555 = vmatpush.bf16.msra.mxu2 %v6086_v22  ;;  %v6142_v22 = vld [vmem:[#allocation4 + $0x1e8] sm:$0xff] }
 0x1d8   :  { %v2531_v27 = vpop.f32.mrf.mxu2  ;;  %v2544_v28 = vpop.f32.mrf.mxu3 }
 0x1d9   :  { %v6096_v27 = vld [vmem:[#allocation4 + $0x78] sm:$0xff] }
 0x1da   :  { %v6084_v28 = vld [vmem:[#allocation4 + $0x18] sm:$0xff] }
 0x1db   :  { %3556 = vmatpush.bf16.msra.mxu2 %v6085_v23 }
 0x1df   :  { %3557 = vmatpush.bf16.msra.mxu2 %v6084_v28 }
 0x1e4   :  { %v2827_v29 = vpop.f32.mrf.mxu0  ;;  %v2840_v30 = vpop.f32.mrf.mxu1 }
 0x1e5   :  { %v2841_v42 = vadd.f32 %v2840_v30, %v2827_v29  ;;  %v6095_v29 = vld [vmem:[#allocation4 + $0x70] sm:$0xff] }
 0x1e6   :  { %v6083_v30 = vld [vmem:[#allocation4 + $0x10] sm:$0xff] }
 0x1e7   :  { %3558 = vmatpush.bf16.msra.mxu2 %v6083_v30 }
 0x1ec   :  { %v2829_v31 = vpop.f32.mrf.mxu0  ;;  %v2842_v32 = vpop.f32.mrf.mxu1 }
 0x1ed   :  { %v6094_v31 = vld [vmem:[#allocation4 + $0x68] sm:$0xff] }
 0x1ee   :  { %v6082_v32 = vld [vmem:[#allocation4 + $0x8] sm:$0xff] }
 0x1ef   :  { %3559 = vmatpush.bf16.msra.mxu2 %v6082_v32  ;;  %v6136_v32 = vld [vmem:[#allocation4 + $0x1b8] sm:$0xff] }
 0x1f0   :  { %v2853_v33 = vpop.f32.mrf.mxu2  ;;  %v2866_v35 = vpop.f32.mrf.mxu3 }
 0x1f1   :  { %v2854_v43 = vadd.f32 %v2853_v33, %v2841_v42  ;;  %v6093_v33 = vld [vmem:[#allocation4 + $0x60] sm:$0xff]  ;;  %v6090_v42 = vld [vmem:[#allocation4 + $0x48] sm:$0xff] }
 0x1f3   :  { %v2867_v48 = vadd.f32 %v2866_v35, %v2854_v43  ;;  %v6081_v35 = vld [vmem:[#allocation4] sm:$0xff]  ;;  %v6102_v43 = vld [vmem:[#allocation4 + $0xa8] sm:$0xff] }
 0x1f4   :  { %3560 = vmatpush.bf16.msra.mxu2 %v6081_v35  ;;  %v6152_v35 = vld [vmem:[#allocation4 + $0x238] sm:$0xff] }
 0x1f5   :  { %v2870_v55 = vadd.f32 %v2867_v48, %v2546_v26  ;;  %v6078_v26 = vld [vmem:[%s6447_s5 + $0x30] sm:$0xff]  ;;  %v6100_v48 = vld [vmem:[#allocation4 + $0x98] sm:$0xff] }
 0x1f8   :  { %v2855_v36 = vpop.f32.mrf.mxu2  ;;  %v2868_v37 = vpop.f32.mrf.mxu3 }
 0x1f9   :  { %v6092_v36 = vld [vmem:[#allocation4 + $0x58] sm:$0xff] }
 0x1fa   :  { %v6104_v37 = vld [vmem:[#allocation4 + $0xb8] sm:$0xff] }
 0x1fb   :  { %3638 = vmatpush.bf16.msra.mxu3 %v6104_v37  ;;  %v6135_v37 = vld [vmem:[#allocation4 + $0x1b0] sm:$0xff] }
 0x204   :  { %v3151_v38 = vpop.f32.mrf.mxu0  ;;  %v3164_v41 = vpop.f32.mrf.mxu1 }
 0x205   :  { %v3165_v49 = vadd.f32 %v3164_v41, %v3151_v38  ;;  %v6091_v38 = vld [vmem:[#allocation4 + $0x50] sm:$0xff] }
 0x206   :  { %v6103_v41 = vld [vmem:[#allocation4 + $0xb0] sm:$0xff] }
 0x207   :  { %3639 = vmatpush.bf16.msra.mxu3 %v6103_v41  ;;  %v6151_v41 = vld [vmem:[#allocation4 + $0x230] sm:$0xff] }
 0x20b   :  { %3640 = vmatpush.bf16.msra.mxu3 %v6102_v43  ;;  %v6134_v43 = vld [vmem:[#allocation4 + $0x1a8] sm:$0xff] }
 0x20c   :  { %v3153_v44 = vpop.f32.mrf.mxu0  ;;  %v3166_v47 = vpop.f32.mrf.mxu1 }
 0x20d   :  { %v6089_v44 = vld [vmem:[#allocation4 + $0x40] sm:$0xff] }
 0x20e   :  { %v6101_v47 = vld [vmem:[#allocation4 + $0xa0] sm:$0xff] }
 0x20f   :  { %3641 = vmatpush.bf16.msra.mxu3 %v6101_v47  ;;  %v6150_v47 = vld [vmem:[#allocation4 + $0x228] sm:$0xff] }
 0x210   :  { %v3177_v50 = vpop.f32.mrf.mxu2  ;;  %v3190_v53 = vpop.f32.mrf.mxu3 }
 0x211   :  { %v3178_v54 = vadd.f32 %v3177_v50, %v3165_v49  ;;  %v6112_v49 = vld [vmem:[#allocation4 + $0xf8] sm:$0xff] }
 0x213   :  { %v3191_v57 = vadd.f32 %v3190_v53, %v3178_v54  ;;  %3642 = vmatpush.bf16.msra.mxu3 %v6100_v48  ;;  %v6120_v53 = vld [vmem:[#allocation4 + $0x138] sm:$0xff]  ;;  %v6099_v54 = vld [vmem:[#allocation4 + $0x90] sm:$0xff] }
 0x214   :  { %3812 = vmatpush.bf16.msrb.mxu2 %v6120_v53 }
 0x215   :  { %v3194_v60 = vadd.f32 %v3191_v57, %v2870_v55  ;;  %v6111_v55 = vld [vmem:[#allocation4 + $0xf0] sm:$0xff] }
 0x216   :  { %v6119_v57 = vld [vmem:[#allocation4 + $0x130] sm:$0xff] }
 0x217   :  { %3195 = vadd.xlane.f32.xlu0 %v3194_v60  ;;  %3643 = vmatpush.bf16.msra.mxu3 %v6099_v54  ;;  %v6133_v54 = vld [vmem:[#allocation4 + $0x1a0] sm:$0xff] }
 0x218   :  { %v3179_v61 = vpop.f32.mrf.mxu2  ;;  %v3192_v62 = vpop.f32.mrf.mxu3  ;;  %3813 = vmatpush.bf16.msrb.mxu2 %v6119_v57  ;;  %v6149_v57 = vld [vmem:[#allocation4 + $0x220] sm:$0xff] }
 0x219   :  { %v6098_v61 = vld [vmem:[#allocation4 + $0x88] sm:$0xff] }
 0x21a   :  { %v6110_v62 = vld [vmem:[#allocation4 + $0xe8] sm:$0xff] }
 0x21b   :  { %3644 = vmatpush.bf16.msra.mxu3 %v6098_v61  ;;  %v6132_v61 = vld [vmem:[#allocation4 + $0x198] sm:$0xff] }
 0x28a   :  { %v3196_v63 = vpop.xlane.xlu0 %3195 }
 0x28b   :  { %v3197_v0 = vmul.f32 0.0078125, %v3196_v63 }
 0x28d   :  { %v3198_v56 = vsub.f32 %v3194_v60, %v3197_v0 }
 0x28f   :  { %v3199_v1 = vmul.f32 %v3198_v56, %v3198_v56 }
 0x291   :  { %3200 = vadd.xlane.f32.xlu0 %v3199_v1 }
 0x304   :  { %v3201_v39 = vpop.xlane.xlu0 %3200 }
 0x305   :  { %v3202_v40 = vmul.f32 0.0078125, %v3201_v39  ;;  %v6097_v39 = vld [vmem:[#allocation4 + $0x80] sm:$0xff] }
 0x306   :  { %3645 = vmatpush.bf16.msra.mxu3 %v6097_v39  ;;  %v6130_v39 = vld [vmem:[#allocation4 + $0x188] sm:$0xff] }
 0x307   :  { %v3203_v5 = vadd.f32 1e-05, %v3202_v40  ;;  %v6109_v40 = vld [vmem:[#allocation4 + $0xe0] sm:$0xff] }
 0x309   :  { %6163 = vrsqrt.f32 %v3203_v5  ;;  %vm3210_vm4 = vweird.f32 %v3203_v5 }
 0x30f   :  { %v6164_v2 = vpop.eup %6163 }
 0x310   :  { %v3205_v3 = vmul.f32 %v6164_v2, %v3203_v5  ;;  %vm3211_vm3 = vweird.f32 %v6164_v2 }
 0x311   :  { %vm3212_vm5 = vmor %vm3210_vm4, %vm3211_vm3 }
 0x312   :  { %v3206_v6 = vmul.f32 %v6164_v2, %v3205_v3  ;;  %v6108_v3 = vld [vmem:[#allocation4 + $0xd8] sm:$0xff] }
 0x314   :  { %v3207_v51 = vmul.f32 0.5, %v3206_v6 }
 0x316   :  { %v3208_v52 = vsub.f32 1.5, %v3207_v51  ;;  %v6116_v51 = vld [vmem:[#allocation4 + $0x118] sm:$0xff] }
 0x318   :  { %v3209_v25 = vmul.f32 %v6164_v2, %v3208_v52  ;;  %v6128_v52 = vld [vmem:[#allocation4 + $0x178] sm:$0xff] }
 0x319   :  { %3899 = vmatpush.bf16.msrb.mxu3 %v6128_v52  ;;  %v6145_v52 = vld [vmem:[#allocation4 + $0x200] sm:$0xff] }
 0x31a   :  { %v3213_v7 = vsel %vm3212_vm5, %v6164_v2, %v3209_v25  ;;  %v6117_v2 = vld [vmem:[#allocation4 + $0x120] sm:$0xff]  ;;  %v6107_v25 = vld [vmem:[#allocation4 + $0xd0] sm:$0xff] }
 0x31b   :  { %v3215_v9 = vmul.f32 %v3214_v8, %v3213_v7  ;;  %v6115_v8 = vld [vmem:[#allocation4 + $0x110] sm:$0xff] }
 0x31c   :  { %v6127_v7 = vld [vmem:[#allocation4 + $0x170] sm:$0xff] }
 0x31d   :  { %3218 = vperm.xlu1 %6160, %v3215_v9   ;;  %3900 = vmatpush.bf16.msrb.mxu3 %v6127_v7 }
 0x325   :  { %3225 = vperm.xlu1 %6160, %v3222_v10   ;;  %v6106_v10 = vld [vmem:[#allocation4 + $0xc8] sm:$0xff] }
 0x38f   :  { %v3219_v11 = vpop.permute.xlu1 %3218 }
 0x390   :  { %v3221_v45 = vmul.f32 %v3219_v11, %v3198_v56  ;;  %v6118_v56 = vld [vmem:[#allocation4 + $0x128] sm:$0xff] }
 0x391   :  { %3814 = vmatpush.bf16.msrb.mxu2 %v6118_v56  ;;  %v6147_v56 = vld [vmem:[#allocation4 + $0x210] sm:$0xff] }
 0x395   :  { %3815 = vmatpush.bf16.msrb.mxu2 %v6117_v2 }
 0x397   :  { %v3226_v46 = vpop.permute.xlu1 %3225 }
 0x398   :  { %v3228_v12 = vadd.f32 %v3226_v46, %v3221_v45  ;;  %v6114_v46 = vld [vmem:[#allocation4 + $0x108] sm:$0xff] }
 0x399   :  { %3816 = vmatpush.bf16.msrb.mxu2 %v6116_v51  ;;  %v6129_v51 = vld [vmem:[#allocation4 + $0x180] sm:$0xff] }
 0x39a   :  { %v3229_v13 = vmax.f32 %v3228_v12, 0.0  ;;  %v6126_v12 = vld [vmem:[#allocation4 + $0x168] sm:$0xff] }
 0x39b   :  { %3901 = vmatpush.bf16.msrb.mxu3 %v6126_v12 }
 0x39c   :  { %v3230_v14 = vpack.c.bf16 %v3229_v13, %v3229_v13 }
 0x39d   :  { %3817 = vmatpush.bf16.msrb.mxu2 %v6115_v8 }
 0x39e   :  { %v3324_v15 = vsel %vm3322_vm6, %v3230_v14, 0 }
 0x39f   :  { %3333 = vmatpush.bf16.msra.mxu0 %v3324_v15  ;;  %6153 = vmatpush.bf16.msra.mxu1 %v3324_v15  ;;  %v6105_v15 = vld [vmem:[#allocation4 + $0xc0] sm:$0xff] }
 0x3a1   :  { %3818 = vmatpush.bf16.msrb.mxu2 %v6114_v46 }
 0x3a2   :  { %5483 = vmatmul.msk.bf16.vlgmr.msra.gmra.mxu0 %vm3294_vm7, %v6072_v16  ;;  %5490 = vmatmul.msk.bf16.vlgmr.msra.gmra.mxu1 %vm3294_vm7, %v6079_v19  ;;  %v6144_v19 = vld [vmem:[#allocation4 + $0x1f8] sm:$0xff] }
 0x3a3   :  { %3485 = vmatpush.bf16.msrb.mxu1 %v6096_v27 }
 0x3a7   :  { %3486 = vmatpush.bf16.msrb.mxu1 %v6095_v29  ;;  %v6141_v29 = vld [vmem:[#allocation4 + $0x1e0] sm:$0xff] }
 0x3ab   :  { %3487 = vmatpush.bf16.msrb.mxu1 %v6094_v31  ;;  %v6121_v31 = vld [vmem:[#allocation4 + $0x140] sm:$0xff] }
 0x3af   :  { %3488 = vmatpush.bf16.msrb.mxu1 %v6093_v33  ;;  %v6140_v33 = vld [vmem:[#allocation4 + $0x1d8] sm:$0xff] }
 0x3b2   :  { %5484 = vmatmul.msk.bf16.gmra.mxu0 %vm3294_vm7, %v6073_v17  ;;  %5491 = vmatmul.msk.bf16.gmra.mxu1 %vm3294_vm7, %v6080_v58  ;;  %v6113_v17 = vld [vmem:[#allocation4 + $0x100] sm:$0xff]  ;;  %v6124_v58 = vld [vmem:[#allocation4 + $0x158] sm:$0xff] }
 0x3b3   :  { %3489 = vmatpush.bf16.msrb.mxu1 %v6092_v36  ;;  %3819 = vmatpush.bf16.msrb.mxu2 %v6113_v17 }
 0x3b7   :  { %3490 = vmatpush.bf16.msrb.mxu1 %v6091_v38  ;;  %v6139_v38 = vld [vmem:[#allocation4 + $0x1d0] sm:$0xff] }
 0x3bb   :  { %3491 = vmatpush.bf16.msrb.mxu1 %v6090_v42 }
 0x3bf   :  { %3492 = vmatpush.bf16.msrb.mxu1 %v6089_v44  ;;  %v6138_v44 = vld [vmem:[#allocation4 + $0x1c8] sm:$0xff] }
 0x3c2   :  { %5485 = vmatmul.msk.bf16.gmra.mxu0 %vm3294_vm7, %v6074_v18  ;;  %v6125_v18 = vld [vmem:[#allocation4 + $0x160] sm:$0xff] }
 0x3c3   :  { %3725 = vmatpush.bf16.msra.mxu1 %v6112_v49  ;;  %3902 = vmatpush.bf16.msrb.mxu3 %v6125_v18 }
 0x3c7   :  { %3726 = vmatpush.bf16.msra.mxu1 %v6111_v55  ;;  %3903 = vmatpush.bf16.msrb.mxu3 %v6124_v58  ;;  %v6137_v55 = vld [vmem:[#allocation4 + $0x1c0] sm:$0xff] }
 0x3cb   :  { %3727 = vmatpush.bf16.msra.mxu1 %v6110_v62  ;;  %3904 = vmatpush.bf16.msrb.mxu3 %v6123_v59  ;;  %v6148_v62 = vld [vmem:[#allocation4 + $0x218] sm:$0xff] }
 0x3cf   :  { %3728 = vmatpush.bf16.msra.mxu1 %v6109_v40  ;;  %v6146_v40 = vld [vmem:[#allocation4 + $0x208] sm:$0xff] }
 0x3d2   :  { %5486 = vmatmul.msk.bf16.gmra.mxu0 %vm3294_vm7, %v6075_v20 }
 0x3d3   :  { %3729 = vmatpush.bf16.msra.mxu1 %v6108_v3 }
 0x3d7   :  { %3730 = vmatpush.bf16.msra.mxu1 %v6107_v25 }
 0x3db   :  { %3731 = vmatpush.bf16.msra.mxu1 %v6106_v10 }
 0x3df   :  { %3732 = vmatpush.bf16.msra.mxu1 %v6105_v15 }
 0x3e2   :  { %5487 = vmatmul.msk.bf16.gmra.mxu0 %vm3294_vm7, %v6076_v34  ;;  %v6143_v34 = vld [vmem:[#allocation4 + $0x1f0] sm:$0xff] }
 0x3f2   :  { %5488 = vmatmul.msk.bf16.gmra.mxu0 %vm3294_vm7, %v6077_v24 }
 0x402   :  { %5489 = vmatmul.msk.bf16.gmra.mxu0 %vm3294_vm7, %v6078_v26  ;;  %v6122_v26 = vld [vmem:[#allocation4 + $0x148] sm:$0xff] }
 0x403   :  { %3905 = vmatpush.bf16.msrb.mxu3 %v6122_v26 }
 0x407   :  { %3906 = vmatpush.bf16.msrb.mxu3 %v6121_v31 }
 0x41f   :  { %v3335_v50 = vpop.f32.mrf.mxu0 }
 0x420   :  { %v3380_v60 = vpack.c.bf16 %v3335_v50, %v3335_v50 }
 0x422   :  { %v3501_v1 = vunpack.c.l.b16 %v3380_v60 }
 0x427   :  { %v3337_v63 = vpop.f32.mrf.mxu0 }
 0x428   :  { %v3381_v0 = vpack.c.bf16 %v3337_v63, %v3337_v63 }
 0x42a   :  { %v3502_v4 = vunpack.c.l.b16 %v3381_v0  ;;  %v6131_v0 = vld [vmem:[#allocation4 + $0x190] sm:$0xff] }
 0x42c   :  { %v3503_v5 = vpack.c.b16 %v3502_v4, %v3501_v1  ;;  %v3370_v1 = vpop.f32.mrf.mxu1 }
 0x42e   :  { %3561 = vmatmul.bf16.vlgmr.msra.gmra.mxu2 %v3503_v5 }
 0x42f   :  { %v3340_v6 = vpop.f32.mrf.mxu0  ;;  %4073 = vmatpush.bf16.msra.mxu2 %v6144_v19 }
 0x430   :  { %v3382_v9 = vpack.c.bf16 %v3340_v6, %v3340_v6 }
 0x432   :  { %v3433_v13 = vunpack.c.l.b16 %v3382_v9  ;;  %v3394_v9 = vpack.c.bf16 %v3370_v1, %v3370_v1 }
 0x433   :  { %4074 = vmatpush.bf16.msra.mxu2 %v6143_v34 }
 0x434   :  { %v3372_v8 = vpop.f32.mrf.mxu1  ;;  %v4021_v12 = vunpack.c.l.b16 %v3394_v9 }
 0x435   :  { %v3395_v10 = vpack.c.bf16 %v3372_v8, %v3372_v8 }
 0x437   :  { %v3342_v11 = vpop.f32.mrf.mxu0  ;;  %4075 = vmatpush.bf16.msra.mxu2 %v6142_v22 }
 0x438   :  { %v3383_v45 = vpack.c.bf16 %v3342_v11, %v3342_v11 }
 0x43a   :  { %v3434_v14 = vunpack.c.l.b16 %v3383_v45 }
 0x43b   :  { %4076 = vmatpush.bf16.msra.mxu2 %v6141_v29 }
 0x43c   :  { %v3435_v16 = vpack.c.b16 %v3434_v14, %v3433_v13  ;;  %v3375_v46 = vpop.f32.mrf.mxu1  ;;  %v4022_v14 = vunpack.c.l.b16 %v3395_v10 }
 0x43d   :  { %v3396_v58 = vpack.c.bf16 %v3375_v46, %v3375_v46 }
 0x43e   :  { %3493 = vmatmul.bf16.vlgmr.msrb.gmra.mxu1 %v3435_v16  ;;  %v4023_v18 = vpack.c.b16 %v4022_v14, %v4021_v12 }
 0x43f   :  { %v3345_v20 = vpop.f32.mrf.mxu0  ;;  %3986 = vmatpush.bf16.msrb.mxu1 %v6136_v32  ;;  %4077 = vmatpush.bf16.msra.mxu2 %v6140_v33  ;;  %v4108_v22 = vunpack.c.l.b16 %v3396_v58 }
 0x440   :  { %v3384_v21 = vpack.c.bf16 %v3345_v20, %v3345_v20 }
 0x442   :  { %v3586_v27 = vunpack.c.l.b16 %v3384_v21 }
 0x443   :  { %3987 = vmatpush.bf16.msrb.mxu1 %v6135_v37  ;;  %4078 = vmatpush.bf16.msra.mxu2 %v6139_v38 }
 0x444   :  { %v3377_v20 = vpop.f32.mrf.mxu1 }
 0x445   :  { %v3397_v34 = vpack.c.bf16 %v3377_v20, %v3377_v20 }
 0x447   :  { %v3347_v23 = vpop.f32.mrf.mxu0  ;;  %3988 = vmatpush.bf16.msrb.mxu1 %v6134_v43  ;;  %4079 = vmatpush.bf16.msra.mxu2 %v6138_v44 }
 0x448   :  { %v3385_v24 = vpack.c.bf16 %v3347_v23, %v3347_v23 }
 0x44a   :  { %v3587_v28 = vunpack.c.l.b16 %v3385_v24  ;;  %v4109_v24 = vunpack.c.l.b16 %v3397_v34 }
 0x44b   :  { %3989 = vmatpush.bf16.msrb.mxu1 %v6133_v54  ;;  %4080 = vmatpush.bf16.msra.mxu2 %v6137_v55 }
 0x44c   :  { %v3588_v30 = vpack.c.b16 %v3587_v28, %v3586_v27  ;;  %v4110_v29 = vpack.c.b16 %v4109_v24, %v4108_v22 }
 0x44e   :  { %3646 = vmatmul.bf16.vlgmr.msra.gmra.mxu3 %v3588_v30 }
 0x44f   :  { %v3350_v36 = vpop.f32.mrf.mxu0  ;;  %4160 = vmatpush.bf16.msra.mxu3 %v6152_v35  ;;  %3990 = vmatpush.bf16.msrb.mxu1 %v6132_v61 }
 0x450   :  { %v3386_v42 = vpack.c.bf16 %v3350_v36, %v3350_v36 }
 0x452   :  { %v3673_v50 = vunpack.c.l.b16 %v3386_v42 }
 0x453   :  { %4161 = vmatpush.bf16.msra.mxu3 %v6151_v41  ;;  %3991 = vmatpush.bf16.msrb.mxu1 %v6131_v0 }
 0x457   :  { %v3352_v48 = vpop.f32.mrf.mxu0  ;;  %4162 = vmatpush.bf16.msra.mxu3 %v6150_v47  ;;  %3992 = vmatpush.bf16.msrb.mxu1 %v6130_v39 }
 0x458   :  { %v3387_v49 = vpack.c.bf16 %v3352_v48, %v3352_v48 }
 0x45a   :  { %v3674_v53 = vunpack.c.l.b16 %v3387_v49 }
 0x45b   :  { %4163 = vmatpush.bf16.msra.mxu3 %v6149_v57  ;;  %3993 = vmatpush.bf16.msrb.mxu1 %v6129_v51 }
 0x45c   :  { %v3675_v60 = vpack.c.b16 %v3674_v53, %v3673_v50 }
 0x45e   :  { %3733 = vmatmul.bf16.vlgmr.msra.gmra.mxu1 %v3675_v60 }
 0x45f   :  { %v3355_v63 = vpop.f32.mrf.mxu0  ;;  %4164 = vmatpush.bf16.msra.mxu3 %v6148_v62 }
 0x460   :  { %v3388_v4 = vpack.c.bf16 %v3355_v63, %v3355_v63 }
 0x462   :  { %v3760_v3 = vunpack.c.l.b16 %v3388_v4 }
 0x463   :  { %4165 = vmatpush.bf16.msra.mxu3 %v6147_v56 }
 0x467   :  { %v3357_v5 = vpop.f32.mrf.mxu0  ;;  %4166 = vmatpush.bf16.msra.mxu3 %v6146_v40 }
 0x468   :  { %v3389_v2 = vpack.c.bf16 %v3357_v5, %v3357_v5 }
 0x46a   :  { %v3761_v6 = vunpack.c.l.b16 %v3389_v2 }
 0x46b   :  { %4167 = vmatpush.bf16.msra.mxu3 %v6145_v52 }
 0x46c   :  { %v3762_v25 = vpack.c.b16 %v3761_v6, %v3760_v3 }
 0x46e   :  { %3820 = vmatmul.bf16.vlgmr.msrb.gmra.mxu2 %v3762_v25 }
 0x46f   :  { %v3360_v7 = vpop.f32.mrf.mxu0 }
 0x470   :  { %v3390_v11 = vpack.c.bf16 %v3360_v7, %v3360_v7 }
 0x472   :  { %v3847_v15 = vunpack.c.l.b16 %v3390_v11 }
 0x477   :  { %v3362_v45 = vpop.f32.mrf.mxu0 }
 0x478   :  { %v3391_v13 = vpack.c.bf16 %v3362_v45, %v3362_v45 }
 0x47a   :  { %v3848_v16 = vunpack.c.l.b16 %v3391_v13 }
 0x47c   :  { %v3849_v17 = vpack.c.b16 %v3848_v16, %v3847_v15 }
 0x47e   :  { %3907 = vmatmul.bf16.vlgmr.msrb.gmra.mxu3 %v3849_v17  ;;  %4081 = vmatmul.bf16.vlgmr.msra.gmra.mxu2 %v4023_v18 }
 0x47f   :  { %v3365_v19 = vpop.f32.mrf.mxu0 }
 0x480   :  { %v3392_v59 = vpack.c.bf16 %v3365_v19, %v3365_v19 }
 0x482   :  { %v3934_v26 = vunpack.c.l.b16 %v3392_v59 }
 0x487   :  { %v3367_v21 = vpop.f32.mrf.mxu0 }
 0x488   :  { %v3393_v23 = vpack.c.bf16 %v3367_v21, %v3367_v21 }
 0x48a   :  { %v3935_v27 = vunpack.c.l.b16 %v3393_v23 }
 0x48c   :  { %v3936_v28 = vpack.c.b16 %v3935_v27, %v3934_v26  ;;  %v4219_v26 = vld [vmem:[%s6449_s7] sm:$0xff] }
 0x48e   :  { %3994 = vmatmul.bf16.vlgmr.msrb.gmra.mxu1 %v3936_v28  ;;  %4168 = vmatmul.bf16.vlgmr.msra.gmra.mxu3 %v4110_v29 }
 0x4b1   :  { %v3562_v30 = vpop.f32.mrf.mxu2 }
 0x4b9   :  { %v3564_v33 = vpop.f32.mrf.mxu2 }
 0x4bb   :  { %v3494_v31 = vpop.f32.mrf.mxu1 }
 0x4bc   :  { %v3563_v42 = vadd.f32 %v3562_v30, %v3494_v31 }
 0x4c3   :  { %v3496_v35 = vpop.f32.mrf.mxu1 }
 0x4c4   :  { %v3565_v53 = vadd.f32 %v3564_v33, %v3496_v35  ;;  %v4220_v33 = vld [vmem:[%s6449_s7 + $0x8] sm:$0xff]  ;;  %v4235_v35 = vld [vmem:[%s6450_s8] sm:$0xff] }
 0x4d1   :  { %v3647_v32 = vpop.f32.mrf.mxu3 }
 0x4d2   :  { %v3652_v47 = vadd.f32 %v3647_v32, %v3563_v42 }
 0x4d9   :  { %v3649_v36 = vpop.f32.mrf.mxu3 }
 0x4da   :  { %v3653_v57 = vadd.f32 %v3649_v36, %v3565_v53 }
 0x4db   :  { %v3734_v37 = vpop.f32.mrf.mxu1 }
 0x4dc   :  { %v3739_v48 = vadd.f32 %v3734_v37, %v3652_v47 }
 0x4e3   :  { %v3736_v43 = vpop.f32.mrf.mxu1 }
 0x4e4   :  { %v3740_v62 = vadd.f32 %v3736_v43, %v3653_v57 }
 0x4f1   :  { %v3821_v38 = vpop.f32.mrf.mxu2 }
 0x4f2   :  { %v3826_v49 = vadd.f32 %v3821_v38, %v3739_v48  ;;  %v4236_v38 = vld [vmem:[%s6450_s8 + $0x8] sm:$0xff] }
 0x4f9   :  { %v3823_v44 = vpop.f32.mrf.mxu2 }
 0x4fa   :  { %v3827_v63 = vadd.f32 %v3823_v44, %v3740_v62 }
 0x501   :  { %v3908_v41 = vpop.f32.mrf.mxu3  ;;  %v4082_v61 = vpop.f32.mrf.mxu2 }
 0x502   :  { %v3913_v54 = vadd.f32 %v3908_v41, %v3826_v49 }
 0x509   :  { %v3910_v50 = vpop.f32.mrf.mxu3  ;;  %v4084_v2 = vpop.f32.mrf.mxu2 }
 0x50a   :  { %v3914_v1 = vadd.f32 %v3910_v50, %v3827_v63 }
 0x50b   :  { %v3995_v55 = vpop.f32.mrf.mxu1 }
 0x50c   :  { %v4000_v60 = vadd.f32 %v3995_v55, %v3913_v54 }
 0x50e   :  { %v4087_v0 = vadd.f32 %v4082_v61, %v4000_v60 }
 0x511   :  { %v4169_v56 = vpop.f32.mrf.mxu3 }
 0x512   :  { %v4174_v4 = vadd.f32 %v4169_v56, %v4087_v0 }
 0x513   :  { %v3997_v39 = vpop.f32.mrf.mxu1 }
 0x514   :  { %v4001_v40 = vadd.f32 %v3997_v39, %v3914_v1  ;;  %v4177_v5 = vsel %vm4176_vm8, %v4174_v4, 0.0 }
 0x515   :  { %4178 = vadd.xlane.f32.xlu2 %v4177_v5 }
 0x516   :  { %v4088_v3 = vadd.f32 %v4084_v2, %v4001_v40 }
 0x519   :  { %v4171_v6 = vpop.f32.mrf.mxu3 }
 0x51a   :  { %v4175_v51 = vadd.f32 %v4171_v6, %v4088_v3 }
 0x51c   :  { %v4180_v52 = vsel %vm4176_vm8, %v4175_v51, 0.0 }
 0x51d   :  { %4181 = vadd.xlane.f32.xlu2 %v4180_v52 }
 0x588   :  { %v4179_v25 = vpop.xlane.xlu2 %4178 }
 0x589   :  { %v4183_v8 = vmul.f32 0.03125, %v4179_v25 }
 0x58b   :  { %v4185_v7 = vsub.f32 %v4174_v4, %v4183_v8 }
 0x58d   :  { %v4187_v9 = vmul.f32 %v4185_v7, %v4185_v7 }
 0x58f   :  { %v4189_v10 = vsel %vm4176_vm8, %v4187_v9, 0.0 }
 0x590   :  { %4190 = vadd.xlane.f32.xlu0 %v4189_v10  ;;  %v4182_v11 = vpop.xlane.xlu2 %4181 }
 0x591   :  { %v4184_v45 = vmul.f32 0.03125, %v4182_v11 }
 0x593   :  { %v4186_v46 = vsub.f32 %v4175_v51, %v4184_v45 }
 0x595   :  { %v4188_v12 = vmul.f32 %v4186_v46, %v4186_v46 }
 0x597   :  { %v4192_v13 = vsel %vm4176_vm8, %v4188_v12, 0.0 }
 0x598   :  { %4193 = vadd.xlane.f32.xlu1 %v4192_v13 }
 0x603   :  { %v4191_v14 = vpop.xlane.xlu0 %4190 }
 0x604   :  { %v4195_v15 = vmul.f32 0.03125, %v4191_v14 }
 0x606   :  { %v4197_v16 = vadd.f32 1e-05, %v4195_v15 }
 0x608   :  { %6165 = vrsqrt.f32 %v4197_v16  ;;  %vm4205_vm10 = vweird.f32 %v4197_v16 }
 0x60b   :  { %v4194_v17 = vpop.xlane.xlu1 %4193 }
 0x60c   :  { %v4196_v18 = vmul.f32 0.03125, %v4194_v17 }
 0x60e   :  { %v6166_v19 = vpop.eup %6165  ;;  %v4198_v20 = vadd.f32 1e-05, %v4196_v18 }
 0x60f   :  { %v4200_v58 = vmul.f32 %v6166_v19, %v4197_v16  ;;  %vm4206_vm9 = vweird.f32 %v6166_v19 }
 0x610   :  { %6167 = vrsqrt.f32 %v4198_v20  ;;  %vm4207_vm11 = vmor %vm4205_vm10, %vm4206_vm9  ;;  %vm4215_vm13 = vweird.f32 %v4198_v20 }
 0x611   :  { %v4201_v34 = vmul.f32 %v6166_v19, %v4200_v58 }
 0x613   :  { %v4202_v59 = vmul.f32 0.5, %v4201_v34 }
 0x615   :  { %v4203_v21 = vsub.f32 1.5, %v4202_v59 }
 0x616   :  { %v6168_v22 = vpop.eup %6167 }
 0x617   :  { %v4210_v23 = vmul.f32 %v6168_v22, %v4198_v20  ;;  %v4204_v24 = vmul.f32 %v6166_v19, %v4203_v21  ;;  %vm4216_vm12 = vweird.f32 %v6168_v22 }
 0x618   :  { %vm4217_vm14 = vmor %vm4215_vm13, %vm4216_vm12 }
 0x619   :  { %v4211_v27 = vmul.f32 %v6168_v22, %v4210_v23  ;;  %v4208_v28 = vsel %vm4207_vm11, %v6166_v19, %v4204_v24 }
 0x61a   :  { %v4221_v29 = vmul.f32 %v4219_v26, %v4208_v28 }
 0x61b   :  { %v4212_v30 = vmul.f32 0.5, %v4211_v27 }
 0x61c   :  { %4225 = vperm.xlu2 %6161, %v4221_v29  }
 0x61d   :  { %v4213_v31 = vsub.f32 1.5, %v4212_v30 }
 0x61f   :  { %v4214_v32 = vmul.f32 %v6168_v22, %v4213_v31 }
 0x621   :  { %v4218_v36 = vsel %vm4217_vm14, %v6168_v22, %v4214_v32 }
 0x622   :  { %v4222_v37 = vmul.f32 %v4220_v33, %v4218_v36 }
 0x624   :  { %4239 = vperm.xlu2 %6161, %v4235_v35   ;;  %4230 = vperm.xlu0 %6162, %v4222_v37  }
 0x62c   :  { %4244 = vperm.xlu2 %6161, %v4236_v38  }
 0x676   :  { %v4226_v41 = vpop.permute.xlu2 %4225 }
 0x677   :  { %v4233_v42 = vmul.f32 %v4226_v41, %v4185_v7 }
 0x67e   :  { %v4240_v43 = vpop.permute.xlu2 %4239 }
 0x67f   :  { %v4247_v44 = vadd.f32 %v4240_v43, %v4233_v42 }
 0x681   :  { %v4249_v47 = vmax.f32 %v4247_v44, 0.0 }
 0x683   :  { %4251 = vst.msk [vmem:[%s6451_s9] sm:$0xff] %vm4176_vm8, %v4249_v47 }
 0x686   :  { %v4245_v50 = vpop.permute.xlu2 %4244 }
 0x696   :  { %v4231_v48 = vpop.permute.xlu0 %4230 }
 0x697   :  { %v4234_v49 = vmul.f32 %v4231_v48, %v4186_v46 }
 0x699   :  { %v4248_v53 = vadd.f32 %v4245_v50, %v4234_v49 }
 0x69b   :  { %v4250_v54 = vmax.f32 %v4248_v53, 0.0 }
 0x69d   :  { %4252 = vst.msk [vmem:[%s6451_s9 + $0x8] sm:$0xff] %vm4176_vm8, %v4250_v54 }
 0x69e   :  { %4257 = vsyncpa [#allocation3], 1 }
 0x69f   :  { %4258 = vsyncpa [#allocation5], 1 }

</bundles_post_ra>
